<compile_context>
chip_gen: v7x
topology: tpu7x:2x2x1
jax: 0.10.0
libtpu: 0.0.40
codegen_flags: <defaults>
</compile_context>

<pallas_src>
import functools

import jax
import jax.numpy as jnp
from jax.experimental import pallas as pl
from jax.experimental.pallas import tpu as pltpu


def _decoder_block_kernel(H, W, B, xp_ref, res_ref, w1_ref, b1_ref, w2_ref,
                          b2_ref, out_ref, col_ref, pad_ref):
    """One grid step processes B images.

    xp_ref : (B, C, Lp)   bf16  zero-padded inputs, flattened over (H+2, W+2)
    res_ref: (1, C, B*L)  f32   exact residual, already in output layout
    w*_ref : (C, 9*C)     bf16  merged im2col weights: w[cout, tap*C + cin]
    b*_ref : (C, 1)       f32
    out_ref: (1, C, B*L)  f32   (wrap columns hold junk; wrapper drops them)
    col_ref: (9*C, B*L)   bf16  im2col scratch (reused for conv1 and conv2)
    pad_ref: (C, B*Lp)    bf16  re-padded conv1 output (conv2 input)
    """
    C = out_ref.shape[1]
    Wp = W + 2
    L = H * Wp
    BL = B * L
    Lp = pad_ref.shape[1] // B
    head = Wp + 1          # flat offset of (row=1, col=1) inside a padded image

    # 1.0 on real image columns, 0.0 on the 2 wrap columns of every flattened
    # row (they act as left/right zero padding for conv2).  Computed once per
    # step on the VPU -- no mask input stream.
    lane = jax.lax.broadcasted_iota(jnp.int32, (1, BL), 1)
    mask = (lane % Wp < W).astype(jnp.float32)

    # ---- conv1: build one (9C, B*L) im2col slab, then ONE MXU matmul --------
    for b in range(B):
        for t in range(9):
            off = (t // 3) * Wp + (t % 3)
            col_ref[t * C:(t + 1) * C, b * L:(b + 1) * L] = \
                xp_ref[b, :, off:off + L]
    acc1 = jnp.dot(w1_ref[...], col_ref[...],
                   preferred_element_type=jnp.float32)        # (C, B*L) f32
    y = jnp.maximum(acc1 + b1_ref[...], 0.0) * mask

    # ---- re-pad the intermediate (bf16) for conv2; only the small per-image
    #      borders are zeroed, the interior is fully overwritten each step.
    yb = y.astype(jnp.bfloat16)
    for b in range(B):
        base = b * Lp
        pad_ref[:, base:base + head] = jnp.zeros((C, head), jnp.bfloat16)
        pad_ref[:, base + head:base + head + L] = yb[:, b * L:(b + 1) * L]
        pad_ref[:, base + head + L:base + Lp] = \
            jnp.zeros((C, Lp - head - L), jnp.bfloat16)

    # ---- conv2: same im2col scheme, reading the bf16 pad scratch ------------
    for b in range(B):
        base = b * Lp
        for t in range(9):
            off = (t // 3) * Wp + (t % 3)
            col_ref[t * C:(t + 1) * C, b * L:(b + 1) * L] = \
                pad_ref[:, base + off:base + off + L]
    acc2 = jnp.dot(w2_ref[...], col_ref[...],
                   preferred_element_type=jnp.float32)        # (C, B*L) f32

    # ---- bias + exact f32 residual, single lane-dense store -----------------
    out_ref[0] = (acc2 + b2_ref[...] + res_ref[0]).astype(out_ref.dtype)


def _grid_steps_for_device(n_images):
    """v7x has 2 TensorCores -> 2 parallel grid steps; v5e/v6e -> 1 step."""
    kind = ""
    try:
        kind = jax.devices()[0].device_kind.lower()
    except Exception:
        pass
    if ("v7" in kind) and n_images >= 2 and n_images % 2 == 0:
        return 2
    return 1


def decoder_block(x_nchw, w1_hwio, b1, w2_hwio, b2, *, grid_steps=None):
    """x_nchw: (N, C, H, W) float32. Returns (N, C, H, W) float32."""
    N, C, H, W = x_nchw.shape
    assert w1_hwio.shape == (3, 3, C, C) and w2_hwio.shape == (3, 3, C, C), \
        "residual path requires in_channels == out_channels"
    assert C % 8 == 0, "channel count must be a multiple of the sublane width"

    Wp = W + 2
    L = H * Wp                                   # per-image working length
    Lp = -(-((H + 2) * Wp + 2) // 128) * 128     # padded flat per-image length
    head = Wp + 1

    G = grid_steps if grid_steps is not None else _grid_steps_for_device(N)
    if N % G != 0:
        G = 1
    B = N // G
    BL = B * L

    # zero-pad spatially, flatten (H+2, W+2) into the lane dim, pad to Lp
    xp = jnp.pad(x_nchw, ((0, 0), (0, 0), (1, 1), (1, 1)))
    xp = xp.reshape(N, C, (H + 2) * Wp)
    xp = jnp.pad(xp, ((0, 0), (0, 0), (0, Lp - (H + 2) * Wp)))
    xp_bf16 = xp.astype(jnp.bfloat16)        # bf16 cast hoisted out of the kernel

    # exact f32 residual, pre-arranged in the per-step (C, B*L) output layout
    residual = xp[:, :, head:head + L]                           # (N, C, L)
    residual = residual.reshape(G, B, C, L).transpose(0, 2, 1, 3).reshape(G, C, BL)

    # HWIO (3,3,Cin,Cout) -> merged im2col weights (Cout, 9*Cin); bf16 once
    w1m = jnp.transpose(w1_hwio, (3, 0, 1, 2)).reshape(C, 9 * C).astype(jnp.bfloat16)
    w2m = jnp.transpose(w2_hwio, (3, 0, 1, 2)).reshape(C, 9 * C).astype(jnp.bfloat16)
    b1r = b1.reshape(C, 1).astype(jnp.float32)
    b2r = b2.reshape(C, 1).astype(jnp.float32)

    kernel = functools.partial(_decoder_block_kernel, H, W, B)

    out_flat = pl.pallas_call(
        kernel,
        out_shape=jax.ShapeDtypeStruct((G, C, BL), jnp.float32),
        grid_spec=pltpu.PrefetchScalarGridSpec(
            num_scalar_prefetch=0,
            grid=(G,),
            in_specs=[
                pl.BlockSpec((B, C, Lp), lambda g: (g, 0, 0)),
                pl.BlockSpec((1, C, BL), lambda g: (g, 0, 0)),
                pl.BlockSpec((C, 9 * C), lambda g: (0, 0)),
                pl.BlockSpec((C, 1), lambda g: (0, 0)),
                pl.BlockSpec((C, 9 * C), lambda g: (0, 0)),
                pl.BlockSpec((C, 1), lambda g: (0, 0)),
            ],
            out_specs=pl.BlockSpec((1, C, BL), lambda g: (g, 0, 0)),
            scratch_shapes=[
                pltpu.VMEM((9 * C, BL), jnp.bfloat16),   # im2col slab
                pltpu.VMEM((C, B * Lp), jnp.bfloat16),   # re-padded intermediate
            ],
        ),
        compiler_params=pltpu.CompilerParams(
            dimension_semantics=("parallel",),
            vmem_limit_bytes=32 * 1024 * 1024),
    )(xp_bf16, residual, w1m, b1r, w2m, b2r)

    # (G, C, B*L) -> (N, C, H, W+2) -> drop the 2 wrap columns (XLA side)
    out = out_flat.reshape(G, C, B, H, Wp).transpose(0, 2, 1, 3, 4)
    out = out.reshape(N, C, H, Wp)
    return out[:, :, :, :W]


def _reference(x_nchw, w1_hwio, b1, w2_hwio, b2):
    """Pure-JAX reference of the same forward pass (use_bn=False path)."""
    x = jnp.transpose(x_nchw, (0, 2, 3, 1))  # NHWC

    def conv3x3(a, w, b):
        y = jax.lax.conv_general_dilated(
            a, w, window_strides=(1, 1), padding="SAME",
            dimension_numbers=("NHWC", "HWIO", "NHWC"))
        return y + b[None, None, None, :]

    y = jnp.maximum(conv3x3(x, w1_hwio, b1), 0.0)
    y = conv3x3(y, w2_hwio, b2)
    y = y + x
    return jnp.transpose(y, (0, 3, 1, 2))


if __name__ == "__main__":
    # Small shapes consistent with the module's forward (in_ch == out_ch).
    N, C, H, W = 2, 8, 16, 16

    key = jax.random.PRNGKey(0)
    kx, kw1, kb1, kw2, kb2 = jax.random.split(key, 5)

    x = jax.random.normal(kx, (N, C, H, W), dtype=jnp.float32)

    # Deterministic init mimicking nn.Conv2d defaults: U(-1/sqrt(fan_in), +).
    fan_in = C * 3 * 3
    bound = 1.0 / (fan_in ** 0.5)
    w1 = jax.random.uniform(kw1, (3, 3, C, C), jnp.float32, -bound, bound)
    b1 = jax.random.uniform(kb1, (C,), jnp.float32, -bound, bound)
    w2 = jax.random.uniform(kw2, (3, 3, C, C), jnp.float32, -bound, bound)
    b2 = jax.random.uniform(kb2, (C,), jnp.float32, -bound, bound)

    out = decoder_block(x, w1, b1, w2, b2)
    out = jax.block_until_ready(out)

    ref = jax.block_until_ready(_reference(x, w1, b1, w2, b2))
    assert out.shape == (N, C, H, W)
    assert jnp.allclose(out, ref, rtol=5e-2, atol=5e-2), (
        f"max abs err {jnp.max(jnp.abs(out - ref))}")

    print("KERNEL_OK")
</pallas_src>

<mosaic_0001>
module attributes {stable_mosaic.version = 11 : i64} {
  func.func @_decoder_block_kernel(%arg0: i32, %arg1: memref<2x8x384xbf16, #tpu.memory_space<vmem>>, %arg2: memref<1x8x576xf32, #tpu.memory_space<vmem>>, %arg3: memref<8x72xbf16, #tpu.memory_space<vmem>>, %arg4: memref<8x1xf32, #tpu.memory_space<vmem>>, %arg5: memref<8x72xbf16, #tpu.memory_space<vmem>>, %arg6: memref<8x1xf32, #tpu.memory_space<vmem>>, %arg7: memref<1x8x576xf32, #tpu.memory_space<vmem>>, %arg8: memref<72x576xbf16, #tpu.memory_space<vmem>>, %arg9: memref<8x768xbf16, #tpu.memory_space<vmem>>) attributes {dimension_semantics = [#tpu.dimension_semantics<parallel>], iteration_bounds = array<i64: 1>, scalar_prefetch = 0 : i64, scratch_operands = 2 : i64, tpu.core_type = #tpu.core_type<tc>, window_params = [{transform_indices = @transform_0, window_bounds = array<i64: 2, 8, 384>}, {transform_indices = @transform_1, window_bounds = array<i64: 1, 8, 576>}, {pipeline_mode = #tpu.pipeline_mode<synchronous>, transform_indices = @transform_2, window_bounds = array<i64: 8, 72>}, {pipeline_mode = #tpu.pipeline_mode<synchronous>, transform_indices = @transform_3, window_bounds = array<i64: 8, 1>}, {pipeline_mode = #tpu.pipeline_mode<synchronous>, transform_indices = @transform_4, window_bounds = array<i64: 8, 72>}, {pipeline_mode = #tpu.pipeline_mode<synchronous>, transform_indices = @transform_5, window_bounds = array<i64: 8, 1>}, {transform_indices = @transform_6, window_bounds = array<i64: 1, 8, 576>}]} {
    %0 = tpu.iota {dimensions = array<i32: 1>} : vector<1x576xi32>
    %c18_i32 = arith.constant 18 : i32
    %c0_i32 = arith.constant 0 : i32
    %1 = arith.cmpi eq, %c18_i32, %c0_i32 : i32
    %c1_i32 = arith.constant 1 : i32
    %2 = arith.select %1, %c1_i32, %c18_i32 : i32
    %3 = vector.broadcast %2 : i32 to vector<1x576xi32>
    %4 = arith.remsi %0, %3 : vector<1x576xi32>
    %c0_i32_0 = arith.constant 0 : i32
    %5 = vector.broadcast %c0_i32_0 : i32 to vector<1x576xi32>
    %6 = arith.cmpi ne, %4, %5 : vector<1x576xi32>
    %c0_i32_1 = arith.constant 0 : i32
    %7 = vector.broadcast %c0_i32_1 : i32 to vector<1x576xi32>
    %8 = arith.cmpi slt, %4, %7 : vector<1x576xi32>
    %c0_i32_2 = arith.constant 0 : i32
    %9 = arith.cmpi slt, %2, %c0_i32_2 : i32
    %10 = vector.broadcast %9 : i1 to vector<1x576xi1>
    %11 = vector.broadcast %10 : vector<1x576xi1> to vector<1x576xi1>
    %12 = arith.xori %8, %11 : vector<1x576xi1>
    %13 = arith.andi %12, %6 : vector<1x576xi1>
    %14 = vector.broadcast %2 : i32 to vector<1x576xi32>
    %15 = arith.addi %4, %14 : vector<1x576xi32>
    %16 = arith.select %13, %15, %4 : vector<1x576xi1>, vector<1x576xi32>
    %c16_i32 = arith.constant 16 : i32
    %17 = vector.broadcast %c16_i32 : i32 to vector<1x576xi32>
    %18 = arith.cmpi slt, %16, %17 : vector<1x576xi32>
    %19 = arith.extui %18 : vector<1x576xi1> to vector<1x576xi32>
    %20 = arith.sitofp %19 : vector<1x576xi32> to vector<1x576xf32>
    %c0 = arith.constant 0 : index
    %c0_3 = arith.constant 0 : index
    %c0_4 = arith.constant 0 : index
    %21 = vector.load %arg1[%c0, %c0_3, %c0_4] : memref<2x8x384xbf16, #tpu.memory_space<vmem>>, vector<1x8x288xbf16>
    %22 = vector.shape_cast %21 : vector<1x8x288xbf16> to vector<8x288xbf16>
    %c0_5 = arith.constant 0 : index
    %c0_6 = arith.constant 0 : index
    %23 = vector.load %arg8[%c0_5, %c0_6] : memref<72x576xbf16, #tpu.memory_space<vmem>>, vector<8x288xbf16>
    tpu.vector_store %arg8[%c0_5, %c0_6], %22 {strides = array<i32>} : memref<72x576xbf16, #tpu.memory_space<vmem>>, vector<8x288xbf16>,
    %c0_7 = arith.constant 0 : index
    %c0_8 = arith.constant 0 : index
    %c1 = arith.constant 1 : index
    %24 = vector.load %arg1[%c0_7, %c0_8, %c1] : memref<2x8x384xbf16, #tpu.memory_space<vmem>>, vector<1x8x288xbf16>
    %25 = vector.shape_cast %24 : vector<1x8x288xbf16> to vector<8x288xbf16>
    %c8 = arith.constant 8 : index
    %c0_9 = arith.constant 0 : index
    %26 = vector.load %arg8[%c8, %c0_9] : memref<72x576xbf16, #tpu.memory_space<vmem>>, vector<8x288xbf16>
    tpu.vector_store %arg8[%c8, %c0_9], %25 {strides = array<i32>} : memref<72x576xbf16, #tpu.memory_space<vmem>>, vector<8x288xbf16>,
    %c0_10 = arith.constant 0 : index
    %c0_11 = arith.constant 0 : index
    %c2 = arith.constant 2 : index
    %27 = vector.load %arg1[%c0_10, %c0_11, %c2] : memref<2x8x384xbf16, #tpu.memory_space<vmem>>, vector<1x8x288xbf16>
    %28 = vector.shape_cast %27 : vector<1x8x288xbf16> to vector<8x288xbf16>
    %c16 = arith.constant 16 : index
    %c0_12 = arith.constant 0 : index
    %29 = vector.load %arg8[%c16, %c0_12] : memref<72x576xbf16, #tpu.memory_space<vmem>>, vector<8x288xbf16>
    tpu.vector_store %arg8[%c16, %c0_12], %28 {strides = array<i32>} : memref<72x576xbf16, #tpu.memory_space<vmem>>, vector<8x288xbf16>,
    %c0_13 = arith.constant 0 : index
    %c0_14 = arith.constant 0 : index
    %c18 = arith.constant 18 : index
    %30 = vector.load %arg1[%c0_13, %c0_14, %c18] : memref<2x8x384xbf16, #tpu.memory_space<vmem>>, vector<1x8x288xbf16>
    %31 = vector.shape_cast %30 : vector<1x8x288xbf16> to vector<8x288xbf16>
    %c24 = arith.constant 24 : index
    %c0_15 = arith.constant 0 : index
    %32 = vector.load %arg8[%c24, %c0_15] : memref<72x576xbf16, #tpu.memory_space<vmem>>, vector<8x288xbf16>
    tpu.vector_store %arg8[%c24, %c0_15], %31 {strides = array<i32>} : memref<72x576xbf16, #tpu.memory_space<vmem>>, vector<8x288xbf16>,
    %c0_16 = arith.constant 0 : index
    %c0_17 = arith.constant 0 : index
    %c19 = arith.constant 19 : index
    %33 = vector.load %arg1[%c0_16, %c0_17, %c19] : memref<2x8x384xbf16, #tpu.memory_space<vmem>>, vector<1x8x288xbf16>
    %34 = vector.shape_cast %33 : vector<1x8x288xbf16> to vector<8x288xbf16>
    %c32 = arith.constant 32 : index
    %c0_18 = arith.constant 0 : index
    %35 = vector.load %arg8[%c32, %c0_18] : memref<72x576xbf16, #tpu.memory_space<vmem>>, vector<8x288xbf16>
    tpu.vector_store %arg8[%c32, %c0_18], %34 {strides = array<i32>} : memref<72x576xbf16, #tpu.memory_space<vmem>>, vector<8x288xbf16>,
    %c0_19 = arith.constant 0 : index
    %c0_20 = arith.constant 0 : index
    %c20 = arith.constant 20 : index
    %36 = vector.load %arg1[%c0_19, %c0_20, %c20] : memref<2x8x384xbf16, #tpu.memory_space<vmem>>, vector<1x8x288xbf16>
    %37 = vector.shape_cast %36 : vector<1x8x288xbf16> to vector<8x288xbf16>
    %c40 = arith.constant 40 : index
    %c0_21 = arith.constant 0 : index
    %38 = vector.load %arg8[%c40, %c0_21] : memref<72x576xbf16, #tpu.memory_space<vmem>>, vector<8x288xbf16>
    tpu.vector_store %arg8[%c40, %c0_21], %37 {strides = array<i32>} : memref<72x576xbf16, #tpu.memory_space<vmem>>, vector<8x288xbf16>,
    %c0_22 = arith.constant 0 : index
    %c0_23 = arith.constant 0 : index
    %c36 = arith.constant 36 : index
    %39 = vector.load %arg1[%c0_22, %c0_23, %c36] : memref<2x8x384xbf16, #tpu.memory_space<vmem>>, vector<1x8x288xbf16>
    %40 = vector.shape_cast %39 : vector<1x8x288xbf16> to vector<8x288xbf16>
    %c48 = arith.constant 48 : index
    %c0_24 = arith.constant 0 : index
    %41 = vector.load %arg8[%c48, %c0_24] : memref<72x576xbf16, #tpu.memory_space<vmem>>, vector<8x288xbf16>
    tpu.vector_store %arg8[%c48, %c0_24], %40 {strides = array<i32>} : memref<72x576xbf16, #tpu.memory_space<vmem>>, vector<8x288xbf16>,
    %c0_25 = arith.constant 0 : index
    %c0_26 = arith.constant 0 : index
    %c37 = arith.constant 37 : index
    %42 = vector.load %arg1[%c0_25, %c0_26, %c37] : memref<2x8x384xbf16, #tpu.memory_space<vmem>>, vector<1x8x288xbf16>
    %43 = vector.shape_cast %42 : vector<1x8x288xbf16> to vector<8x288xbf16>
    %c56 = arith.constant 56 : index
    %c0_27 = arith.constant 0 : index
    %44 = vector.load %arg8[%c56, %c0_27] : memref<72x576xbf16, #tpu.memory_space<vmem>>, vector<8x288xbf16>
    tpu.vector_store %arg8[%c56, %c0_27], %43 {strides = array<i32>} : memref<72x576xbf16, #tpu.memory_space<vmem>>, vector<8x288xbf16>,
    %c0_28 = arith.constant 0 : index
    %c0_29 = arith.constant 0 : index
    %c38 = arith.constant 38 : index
    %45 = vector.load %arg1[%c0_28, %c0_29, %c38] : memref<2x8x384xbf16, #tpu.memory_space<vmem>>, vector<1x8x288xbf16>
    %46 = vector.shape_cast %45 : vector<1x8x288xbf16> to vector<8x288xbf16>
    %c64 = arith.constant 64 : index
    %c0_30 = arith.constant 0 : index
    %47 = vector.load %arg8[%c64, %c0_30] : memref<72x576xbf16, #tpu.memory_space<vmem>>, vector<8x288xbf16>
    tpu.vector_store %arg8[%c64, %c0_30], %46 {strides = array<i32>} : memref<72x576xbf16, #tpu.memory_space<vmem>>, vector<8x288xbf16>,
    %c1_31 = arith.constant 1 : index
    %c0_32 = arith.constant 0 : index
    %c0_33 = arith.constant 0 : index
    %48 = vector.load %arg1[%c1_31, %c0_32, %c0_33] : memref<2x8x384xbf16, #tpu.memory_space<vmem>>, vector<1x8x288xbf16>
    %49 = vector.shape_cast %48 : vector<1x8x288xbf16> to vector<8x288xbf16>
    %c0_34 = arith.constant 0 : index
    %c288 = arith.constant 288 : index
    %50 = vector.load %arg8[%c0_34, %c288] : memref<72x576xbf16, #tpu.memory_space<vmem>>, vector<8x288xbf16>
    tpu.vector_store %arg8[%c0_34, %c288], %49 {strides = array<i32>} : memref<72x576xbf16, #tpu.memory_space<vmem>>, vector<8x288xbf16>,
    %c1_35 = arith.constant 1 : index
    %c0_36 = arith.constant 0 : index
    %c1_37 = arith.constant 1 : index
    %51 = vector.load %arg1[%c1_35, %c0_36, %c1_37] : memref<2x8x384xbf16, #tpu.memory_space<vmem>>, vector<1x8x288xbf16>
    %52 = vector.shape_cast %51 : vector<1x8x288xbf16> to vector<8x288xbf16>
    %c8_38 = arith.constant 8 : index
    %c288_39 = arith.constant 288 : index
    %53 = vector.load %arg8[%c8_38, %c288_39] : memref<72x576xbf16, #tpu.memory_space<vmem>>, vector<8x288xbf16>
    tpu.vector_store %arg8[%c8_38, %c288_39], %52 {strides = array<i32>} : memref<72x576xbf16, #tpu.memory_space<vmem>>, vector<8x288xbf16>,
    %c1_40 = arith.constant 1 : index
    %c0_41 = arith.constant 0 : index
    %c2_42 = arith.constant 2 : index
    %54 = vector.load %arg1[%c1_40, %c0_41, %c2_42] : memref<2x8x384xbf16, #tpu.memory_space<vmem>>, vector<1x8x288xbf16>
    %55 = vector.shape_cast %54 : vector<1x8x288xbf16> to vector<8x288xbf16>
    %c16_43 = arith.constant 16 : index
    %c288_44 = arith.constant 288 : index
    %56 = vector.load %arg8[%c16_43, %c288_44] : memref<72x576xbf16, #tpu.memory_space<vmem>>, vector<8x288xbf16>
    tpu.vector_store %arg8[%c16_43, %c288_44], %55 {strides = array<i32>} : memref<72x576xbf16, #tpu.memory_space<vmem>>, vector<8x288xbf16>,
    %c1_45 = arith.constant 1 : index
    %c0_46 = arith.constant 0 : index
    %c18_47 = arith.constant 18 : index
    %57 = vector.load %arg1[%c1_45, %c0_46, %c18_47] : memref<2x8x384xbf16, #tpu.memory_space<vmem>>, vector<1x8x288xbf16>
    %58 = vector.shape_cast %57 : vector<1x8x288xbf16> to vector<8x288xbf16>
    %c24_48 = arith.constant 24 : index
    %c288_49 = arith.constant 288 : index
    %59 = vector.load %arg8[%c24_48, %c288_49] : memref<72x576xbf16, #tpu.memory_space<vmem>>, vector<8x288xbf16>
    tpu.vector_store %arg8[%c24_48, %c288_49], %58 {strides = array<i32>} : memref<72x576xbf16, #tpu.memory_space<vmem>>, vector<8x288xbf16>,
    %c1_50 = arith.constant 1 : index
    %c0_51 = arith.constant 0 : index
    %c19_52 = arith.constant 19 : index
    %60 = vector.load %arg1[%c1_50, %c0_51, %c19_52] : memref<2x8x384xbf16, #tpu.memory_space<vmem>>, vector<1x8x288xbf16>
    %61 = vector.shape_cast %60 : vector<1x8x288xbf16> to vector<8x288xbf16>
    %c32_53 = arith.constant 32 : index
    %c288_54 = arith.constant 288 : index
    %62 = vector.load %arg8[%c32_53, %c288_54] : memref<72x576xbf16, #tpu.memory_space<vmem>>, vector<8x288xbf16>
    tpu.vector_store %arg8[%c32_53, %c288_54], %61 {strides = array<i32>} : memref<72x576xbf16, #tpu.memory_space<vmem>>, vector<8x288xbf16>,
    %c1_55 = arith.constant 1 : index
    %c0_56 = arith.constant 0 : index
    %c20_57 = arith.constant 20 : index
    %63 = vector.load %arg1[%c1_55, %c0_56, %c20_57] : memref<2x8x384xbf16, #tpu.memory_space<vmem>>, vector<1x8x288xbf16>
    %64 = vector.shape_cast %63 : vector<1x8x288xbf16> to vector<8x288xbf16>
    %c40_58 = arith.constant 40 : index
    %c288_59 = arith.constant 288 : index
    %65 = vector.load %arg8[%c40_58, %c288_59] : memref<72x576xbf16, #tpu.memory_space<vmem>>, vector<8x288xbf16>
    tpu.vector_store %arg8[%c40_58, %c288_59], %64 {strides = array<i32>} : memref<72x576xbf16, #tpu.memory_space<vmem>>, vector<8x288xbf16>,
    %c1_60 = arith.constant 1 : index
    %c0_61 = arith.constant 0 : index
    %c36_62 = arith.constant 36 : index
    %66 = vector.load %arg1[%c1_60, %c0_61, %c36_62] : memref<2x8x384xbf16, #tpu.memory_space<vmem>>, vector<1x8x288xbf16>
    %67 = vector.shape_cast %66 : vector<1x8x288xbf16> to vector<8x288xbf16>
    %c48_63 = arith.constant 48 : index
    %c288_64 = arith.constant 288 : index
    %68 = vector.load %arg8[%c48_63, %c288_64] : memref<72x576xbf16, #tpu.memory_space<vmem>>, vector<8x288xbf16>
    tpu.vector_store %arg8[%c48_63, %c288_64], %67 {strides = array<i32>} : memref<72x576xbf16, #tpu.memory_space<vmem>>, vector<8x288xbf16>,
    %c1_65 = arith.constant 1 : index
    %c0_66 = arith.constant 0 : index
    %c37_67 = arith.constant 37 : index
    %69 = vector.load %arg1[%c1_65, %c0_66, %c37_67] : memref<2x8x384xbf16, #tpu.memory_space<vmem>>, vector<1x8x288xbf16>
    %70 = vector.shape_cast %69 : vector<1x8x288xbf16> to vector<8x288xbf16>
    %c56_68 = arith.constant 56 : index
    %c288_69 = arith.constant 288 : index
    %71 = vector.load %arg8[%c56_68, %c288_69] : memref<72x576xbf16, #tpu.memory_space<vmem>>, vector<8x288xbf16>
    tpu.vector_store %arg8[%c56_68, %c288_69], %70 {strides = array<i32>} : memref<72x576xbf16, #tpu.memory_space<vmem>>, vector<8x288xbf16>,
    %c1_70 = arith.constant 1 : index
    %c0_71 = arith.constant 0 : index
    %c38_72 = arith.constant 38 : index
    %72 = vector.load %arg1[%c1_70, %c0_71, %c38_72] : memref<2x8x384xbf16, #tpu.memory_space<vmem>>, vector<1x8x288xbf16>
    %73 = vector.shape_cast %72 : vector<1x8x288xbf16> to vector<8x288xbf16>
    %c64_73 = arith.constant 64 : index
    %c288_74 = arith.constant 288 : index
    %74 = vector.load %arg8[%c64_73, %c288_74] : memref<72x576xbf16, #tpu.memory_space<vmem>>, vector<8x288xbf16>
    tpu.vector_store %arg8[%c64_73, %c288_74], %73 {strides = array<i32>} : memref<72x576xbf16, #tpu.memory_space<vmem>>, vector<8x288xbf16>,
    %c0_75 = arith.constant 0 : index
    %c0_76 = arith.constant 0 : index
    %75 = vector.load %arg3[%c0_75, %c0_76] : memref<8x72xbf16, #tpu.memory_space<vmem>>, vector<8x72xbf16>
    %c0_77 = arith.constant 0 : index
    %c0_78 = arith.constant 0 : index
    %76 = vector.load %arg8[%c0_77, %c0_78] : memref<72x576xbf16, #tpu.memory_space<vmem>>, vector<72x576xbf16>
    %cst = arith.constant dense<0.000000e+00> : vector<8x576xf32>
    %77 = tpu.matmul %75, %76, %cst {dimension_numbers = #tpu.dot_dimension_numbers<[1], [0], [0], [1], [0, 0, 1, 1], [], []>} : vector<8x72xbf16>, vector<72x576xbf16>, vector<8x576xf32> -> vector<8x576xf32>
    %c0_79 = arith.constant 0 : index
    %c0_80 = arith.constant 0 : index
    %78 = vector.load %arg4[%c0_79, %c0_80] : memref<8x1xf32, #tpu.memory_space<vmem>>, vector<8x1xf32>
    %79 = vector.broadcast %78 : vector<8x1xf32> to vector<8x576xf32>
    %80 = arith.addf %77, %79 : vector<8x576xf32>
    %cst_81 = arith.constant 0.000000e+00 : f32
    %81 = vector.broadcast %cst_81 : f32 to vector<8x576xf32>
    %82 = arith.maximumf %80, %81 : vector<8x576xf32>
    %83 = vector.broadcast %20 : vector<1x576xf32> to vector<8x576xf32>
    %84 = arith.mulf %82, %83 : vector<8x576xf32>
    %85 = arith.truncf %84 : vector<8x576xf32> to vector<8x576xbf16>
    %cst_82 = arith.constant 0.000000e+00 : bf16
    %86 = vector.broadcast %cst_82 : bf16 to vector<8x19xbf16>
    %c0_83 = arith.constant 0 : index
    %c0_84 = arith.constant 0 : index
    %87 = vector.load %arg9[%c0_83, %c0_84] : memref<8x768xbf16, #tpu.memory_space<vmem>>, vector<8x19xbf16>
    tpu.vector_store %arg9[%c0_83, %c0_84], %86 {strides = array<i32>} : memref<8x768xbf16, #tpu.memory_space<vmem>>, vector<8x19xbf16>,
    %88 = vector.extract_strided_slice %85 {offsets = [0, 0], sizes = [8, 288], strides = [1, 1]} : vector<8x576xbf16> to vector<8x288xbf16>
    %c0_85 = arith.constant 0 : index
    %c19_86 = arith.constant 19 : index
    %89 = vector.load %arg9[%c0_85, %c19_86] : memref<8x768xbf16, #tpu.memory_space<vmem>>, vector<8x288xbf16>
    tpu.vector_store %arg9[%c0_85, %c19_86], %88 {strides = array<i32>} : memref<8x768xbf16, #tpu.memory_space<vmem>>, vector<8x288xbf16>,
    %cst_87 = arith.constant 0.000000e+00 : bf16
    %90 = vector.broadcast %cst_87 : bf16 to vector<8x77xbf16>
    %c0_88 = arith.constant 0 : index
    %c307 = arith.constant 307 : index
    %91 = vector.load %arg9[%c0_88, %c307] : memref<8x768xbf16, #tpu.memory_space<vmem>>, vector<8x77xbf16>
    tpu.vector_store %arg9[%c0_88, %c307], %90 {strides = array<i32>} : memref<8x768xbf16, #tpu.memory_space<vmem>>, vector<8x77xbf16>,
    %cst_89 = arith.constant 0.000000e+00 : bf16
    %92 = vector.broadcast %cst_89 : bf16 to vector<8x19xbf16>
    %c0_90 = arith.constant 0 : index
    %c384 = arith.constant 384 : index
    %93 = vector.load %arg9[%c0_90, %c384] : memref<8x768xbf16, #tpu.memory_space<vmem>>, vector<8x19xbf16>
    tpu.vector_store %arg9[%c0_90, %c384], %92 {strides = array<i32>} : memref<8x768xbf16, #tpu.memory_space<vmem>>, vector<8x19xbf16>,
    %94 = vector.extract_strided_slice %85 {offsets = [0, 288], sizes = [8, 288], strides = [1, 1]} : vector<8x576xbf16> to vector<8x288xbf16>
    %c0_91 = arith.constant 0 : index
    %c403 = arith.constant 403 : index
    %95 = vector.load %arg9[%c0_91, %c403] : memref<8x768xbf16, #tpu.memory_space<vmem>>, vector<8x288xbf16>
    tpu.vector_store %arg9[%c0_91, %c403], %94 {strides = array<i32>} : memref<8x768xbf16, #tpu.memory_space<vmem>>, vector<8x288xbf16>,
    %cst_92 = arith.constant 0.000000e+00 : bf16
    %96 = vector.broadcast %cst_92 : bf16 to vector<8x77xbf16>
    %c0_93 = arith.constant 0 : index
    %c691 = arith.constant 691 : index
    %97 = vector.load %arg9[%c0_93, %c691] : memref<8x768xbf16, #tpu.memory_space<vmem>>, vector<8x77xbf16>
    tpu.vector_store %arg9[%c0_93, %c691], %96 {strides = array<i32>} : memref<8x768xbf16, #tpu.memory_space<vmem>>, vector<8x77xbf16>,
    %c0_94 = arith.constant 0 : index
    %c0_95 = arith.constant 0 : index
    %98 = vector.load %arg9[%c0_94, %c0_95] : memref<8x768xbf16, #tpu.memory_space<vmem>>, vector<8x288xbf16>
    %c0_96 = arith.constant 0 : index
    %c0_97 = arith.constant 0 : index
    %99 = vector.load %arg8[%c0_96, %c0_97] : memref<72x576xbf16, #tpu.memory_space<vmem>>, vector<8x288xbf16>
    tpu.vector_store %arg8[%c0_96, %c0_97], %98 {strides = array<i32>} : memref<72x576xbf16, #tpu.memory_space<vmem>>, vector<8x288xbf16>,
    %c0_98 = arith.constant 0 : index
    %c1_99 = arith.constant 1 : index
    %100 = vector.load %arg9[%c0_98, %c1_99] : memref<8x768xbf16, #tpu.memory_space<vmem>>, vector<8x288xbf16>
    %c8_100 = arith.constant 8 : index
    %c0_101 = arith.constant 0 : index
    %101 = vector.load %arg8[%c8_100, %c0_101] : memref<72x576xbf16, #tpu.memory_space<vmem>>, vector<8x288xbf16>
    tpu.vector_store %arg8[%c8_100, %c0_101], %100 {strides = array<i32>} : memref<72x576xbf16, #tpu.memory_space<vmem>>, vector<8x288xbf16>,
    %c0_102 = arith.constant 0 : index
    %c2_103 = arith.constant 2 : index
    %102 = vector.load %arg9[%c0_102, %c2_103] : memref<8x768xbf16, #tpu.memory_space<vmem>>, vector<8x288xbf16>
    %c16_104 = arith.constant 16 : index
    %c0_105 = arith.constant 0 : index
    %103 = vector.load %arg8[%c16_104, %c0_105] : memref<72x576xbf16, #tpu.memory_space<vmem>>, vector<8x288xbf16>
    tpu.vector_store %arg8[%c16_104, %c0_105], %102 {strides = array<i32>} : memref<72x576xbf16, #tpu.memory_space<vmem>>, vector<8x288xbf16>,
    %c0_106 = arith.constant 0 : index
    %c18_107 = arith.constant 18 : index
    %104 = vector.load %arg9[%c0_106, %c18_107] : memref<8x768xbf16, #tpu.memory_space<vmem>>, vector<8x288xbf16>
    %c24_108 = arith.constant 24 : index
    %c0_109 = arith.constant 0 : index
    %105 = vector.load %arg8[%c24_108, %c0_109] : memref<72x576xbf16, #tpu.memory_space<vmem>>, vector<8x288xbf16>
    tpu.vector_store %arg8[%c24_108, %c0_109], %104 {strides = array<i32>} : memref<72x576xbf16, #tpu.memory_space<vmem>>, vector<8x288xbf16>,
    %c0_110 = arith.constant 0 : index
    %c19_111 = arith.constant 19 : index
    %106 = vector.load %arg9[%c0_110, %c19_111] : memref<8x768xbf16, #tpu.memory_space<vmem>>, vector<8x288xbf16>
    %c32_112 = arith.constant 32 : index
    %c0_113 = arith.constant 0 : index
    %107 = vector.load %arg8[%c32_112, %c0_113] : memref<72x576xbf16, #tpu.memory_space<vmem>>, vector<8x288xbf16>
    tpu.vector_store %arg8[%c32_112, %c0_113], %106 {strides = array<i32>} : memref<72x576xbf16, #tpu.memory_space<vmem>>, vector<8x288xbf16>,
    %c0_114 = arith.constant 0 : index
    %c20_115 = arith.constant 20 : index
    %108 = vector.load %arg9[%c0_114, %c20_115] : memref<8x768xbf16, #tpu.memory_space<vmem>>, vector<8x288xbf16>
    %c40_116 = arith.constant 40 : index
    %c0_117 = arith.constant 0 : index
    %109 = vector.load %arg8[%c40_116, %c0_117] : memref<72x576xbf16, #tpu.memory_space<vmem>>, vector<8x288xbf16>
    tpu.vector_store %arg8[%c40_116, %c0_117], %108 {strides = array<i32>} : memref<72x576xbf16, #tpu.memory_space<vmem>>, vector<8x288xbf16>,
    %c0_118 = arith.constant 0 : index
    %c36_119 = arith.constant 36 : index
    %110 = vector.load %arg9[%c0_118, %c36_119] : memref<8x768xbf16, #tpu.memory_space<vmem>>, vector<8x288xbf16>
    %c48_120 = arith.constant 48 : index
    %c0_121 = arith.constant 0 : index
    %111 = vector.load %arg8[%c48_120, %c0_121] : memref<72x576xbf16, #tpu.memory_space<vmem>>, vector<8x288xbf16>
    tpu.vector_store %arg8[%c48_120, %c0_121], %110 {strides = array<i32>} : memref<72x576xbf16, #tpu.memory_space<vmem>>, vector<8x288xbf16>,
    %c0_122 = arith.constant 0 : index
    %c37_123 = arith.constant 37 : index
    %112 = vector.load %arg9[%c0_122, %c37_123] : memref<8x768xbf16, #tpu.memory_space<vmem>>, vector<8x288xbf16>
    %c56_124 = arith.constant 56 : index
    %c0_125 = arith.constant 0 : index
    %113 = vector.load %arg8[%c56_124, %c0_125] : memref<72x576xbf16, #tpu.memory_space<vmem>>, vector<8x288xbf16>
    tpu.vector_store %arg8[%c56_124, %c0_125], %112 {strides = array<i32>} : memref<72x576xbf16, #tpu.memory_space<vmem>>, vector<8x288xbf16>,
    %c0_126 = arith.constant 0 : index
    %c38_127 = arith.constant 38 : index
    %114 = vector.load %arg9[%c0_126, %c38_127] : memref<8x768xbf16, #tpu.memory_space<vmem>>, vector<8x288xbf16>
    %c64_128 = arith.constant 64 : index
    %c0_129 = arith.constant 0 : index
    %115 = vector.load %arg8[%c64_128, %c0_129] : memref<72x576xbf16, #tpu.memory_space<vmem>>, vector<8x288xbf16>
    tpu.vector_store %arg8[%c64_128, %c0_129], %114 {strides = array<i32>} : memref<72x576xbf16, #tpu.memory_space<vmem>>, vector<8x288xbf16>,
    %c0_130 = arith.constant 0 : index
    %c384_131 = arith.constant 384 : index
    %116 = vector.load %arg9[%c0_130, %c384_131] : memref<8x768xbf16, #tpu.memory_space<vmem>>, vector<8x288xbf16>
    %c0_132 = arith.constant 0 : index
    %c288_133 = arith.constant 288 : index
    %117 = vector.load %arg8[%c0_132, %c288_133] : memref<72x576xbf16, #tpu.memory_space<vmem>>, vector<8x288xbf16>
    tpu.vector_store %arg8[%c0_132, %c288_133], %116 {strides = array<i32>} : memref<72x576xbf16, #tpu.memory_space<vmem>>, vector<8x288xbf16>,
    %c0_134 = arith.constant 0 : index
    %c385 = arith.constant 385 : index
    %118 = vector.load %arg9[%c0_134, %c385] : memref<8x768xbf16, #tpu.memory_space<vmem>>, vector<8x288xbf16>
    %c8_135 = arith.constant 8 : index
    %c288_136 = arith.constant 288 : index
    %119 = vector.load %arg8[%c8_135, %c288_136] : memref<72x576xbf16, #tpu.memory_space<vmem>>, vector<8x288xbf16>
    tpu.vector_store %arg8[%c8_135, %c288_136], %118 {strides = array<i32>} : memref<72x576xbf16, #tpu.memory_space<vmem>>, vector<8x288xbf16>,
    %c0_137 = arith.constant 0 : index
    %c386 = arith.constant 386 : index
    %120 = vector.load %arg9[%c0_137, %c386] : memref<8x768xbf16, #tpu.memory_space<vmem>>, vector<8x288xbf16>
    %c16_138 = arith.constant 16 : index
    %c288_139 = arith.constant 288 : index
    %121 = vector.load %arg8[%c16_138, %c288_139] : memref<72x576xbf16, #tpu.memory_space<vmem>>, vector<8x288xbf16>
    tpu.vector_store %arg8[%c16_138, %c288_139], %120 {strides = array<i32>} : memref<72x576xbf16, #tpu.memory_space<vmem>>, vector<8x288xbf16>,
    %c0_140 = arith.constant 0 : index
    %c402 = arith.constant 402 : index
    %122 = vector.load %arg9[%c0_140, %c402] : memref<8x768xbf16, #tpu.memory_space<vmem>>, vector<8x288xbf16>
    %c24_141 = arith.constant 24 : index
    %c288_142 = arith.constant 288 : index
    %123 = vector.load %arg8[%c24_141, %c288_142] : memref<72x576xbf16, #tpu.memory_space<vmem>>, vector<8x288xbf16>
    tpu.vector_store %arg8[%c24_141, %c288_142], %122 {strides = array<i32>} : memref<72x576xbf16, #tpu.memory_space<vmem>>, vector<8x288xbf16>,
    %c0_143 = arith.constant 0 : index
    %c403_144 = arith.constant 403 : index
    %124 = vector.load %arg9[%c0_143, %c403_144] : memref<8x768xbf16, #tpu.memory_space<vmem>>, vector<8x288xbf16>
    %c32_145 = arith.constant 32 : index
    %c288_146 = arith.constant 288 : index
    %125 = vector.load %arg8[%c32_145, %c288_146] : memref<72x576xbf16, #tpu.memory_space<vmem>>, vector<8x288xbf16>
    tpu.vector_store %arg8[%c32_145, %c288_146], %124 {strides = array<i32>} : memref<72x576xbf16, #tpu.memory_space<vmem>>, vector<8x288xbf16>,
    %c0_147 = arith.constant 0 : index
    %c404 = arith.constant 404 : index
    %126 = vector.load %arg9[%c0_147, %c404] : memref<8x768xbf16, #tpu.memory_space<vmem>>, vector<8x288xbf16>
    %c40_148 = arith.constant 40 : index
    %c288_149 = arith.constant 288 : index
    %127 = vector.load %arg8[%c40_148, %c288_149] : memref<72x576xbf16, #tpu.memory_space<vmem>>, vector<8x288xbf16>
    tpu.vector_store %arg8[%c40_148, %c288_149], %126 {strides = array<i32>} : memref<72x576xbf16, #tpu.memory_space<vmem>>, vector<8x288xbf16>,
    %c0_150 = arith.constant 0 : index
    %c420 = arith.constant 420 : index
    %128 = vector.load %arg9[%c0_150, %c420] : memref<8x768xbf16, #tpu.memory_space<vmem>>, vector<8x288xbf16>
    %c48_151 = arith.constant 48 : index
    %c288_152 = arith.constant 288 : index
    %129 = vector.load %arg8[%c48_151, %c288_152] : memref<72x576xbf16, #tpu.memory_space<vmem>>, vector<8x288xbf16>
    tpu.vector_store %arg8[%c48_151, %c288_152], %128 {strides = array<i32>} : memref<72x576xbf16, #tpu.memory_space<vmem>>, vector<8x288xbf16>,
    %c0_153 = arith.constant 0 : index
    %c421 = arith.constant 421 : index
    %130 = vector.load %arg9[%c0_153, %c421] : memref<8x768xbf16, #tpu.memory_space<vmem>>, vector<8x288xbf16>
    %c56_154 = arith.constant 56 : index
    %c288_155 = arith.constant 288 : index
    %131 = vector.load %arg8[%c56_154, %c288_155] : memref<72x576xbf16, #tpu.memory_space<vmem>>, vector<8x288xbf16>
    tpu.vector_store %arg8[%c56_154, %c288_155], %130 {strides = array<i32>} : memref<72x576xbf16, #tpu.memory_space<vmem>>, vector<8x288xbf16>,
    %c0_156 = arith.constant 0 : index
    %c422 = arith.constant 422 : index
    %132 = vector.load %arg9[%c0_156, %c422] : memref<8x768xbf16, #tpu.memory_space<vmem>>, vector<8x288xbf16>
    %c64_157 = arith.constant 64 : index
    %c288_158 = arith.constant 288 : index
    %133 = vector.load %arg8[%c64_157, %c288_158] : memref<72x576xbf16, #tpu.memory_space<vmem>>, vector<8x288xbf16>
    tpu.vector_store %arg8[%c64_157, %c288_158], %132 {strides = array<i32>} : memref<72x576xbf16, #tpu.memory_space<vmem>>, vector<8x288xbf16>,
    %c0_159 = arith.constant 0 : index
    %c0_160 = arith.constant 0 : index
    %134 = vector.load %arg5[%c0_159, %c0_160] : memref<8x72xbf16, #tpu.memory_space<vmem>>, vector<8x72xbf16>
    %c0_161 = arith.constant 0 : index
    %c0_162 = arith.constant 0 : index
    %135 = vector.load %arg8[%c0_161, %c0_162] : memref<72x576xbf16, #tpu.memory_space<vmem>>, vector<72x576xbf16>
    %cst_163 = arith.constant dense<0.000000e+00> : vector<8x576xf32>
    %136 = tpu.matmul %134, %135, %cst_163 {dimension_numbers = #tpu.dot_dimension_numbers<[1], [0], [0], [1], [0, 0, 1, 1], [], []>} : vector<8x72xbf16>, vector<72x576xbf16>, vector<8x576xf32> -> vector<8x576xf32>
    %c0_164 = arith.constant 0 : index
    %c0_165 = arith.constant 0 : index
    %137 = vector.load %arg6[%c0_164, %c0_165] : memref<8x1xf32, #tpu.memory_space<vmem>>, vector<8x1xf32>
    %138 = vector.broadcast %137 : vector<8x1xf32> to vector<8x576xf32>
    %139 = arith.addf %136, %138 : vector<8x576xf32>
    %c0_166 = arith.constant 0 : index
    %c0_167 = arith.constant 0 : index
    %c0_168 = arith.constant 0 : index
    %140 = vector.load %arg2[%c0_166, %c0_167, %c0_168] : memref<1x8x576xf32, #tpu.memory_space<vmem>>, vector<1x8x576xf32>
    %141 = vector.shape_cast %140 : vector<1x8x576xf32> to vector<8x576xf32>
    %142 = arith.addf %139, %141 : vector<8x576xf32>
    %c0_169 = arith.constant 0 : index
    %c0_170 = arith.constant 0 : index
    %c0_171 = arith.constant 0 : index
    %143 = vector.load %arg7[%c0_169, %c0_170, %c0_171] : memref<1x8x576xf32, #tpu.memory_space<vmem>>, vector<1x8x576xf32>
    %144 = vector.shape_cast %143 : vector<1x8x576xf32> to vector<8x576xf32>
    %145 = vector.shape_cast %142 : vector<8x576xf32> to vector<1x8x576xf32>
    tpu.vector_store %arg7[%c0_169, %c0_170, %c0_171], %145 {strides = array<i32>} : memref<1x8x576xf32, #tpu.memory_space<vmem>>, vector<1x8x576xf32>,
    return
  }
  func.func @transform_0(%arg0: i32) -> (i32, i32, i32) {
    %c0_i32 = arith.constant 0 : i32
    %c0_i32_0 = arith.constant 0 : i32
    %c0_i32_1 = arith.constant 0 : i32
    return %arg0, %c0_i32, %c0_i32_0 : i32, i32, i32
  }
  func.func @transform_1(%arg0: i32) -> (i32, i32, i32) {
    %c0_i32 = arith.constant 0 : i32
    %c0_i32_0 = arith.constant 0 : i32
    %c0_i32_1 = arith.constant 0 : i32
    return %arg0, %c0_i32, %c0_i32_0 : i32, i32, i32
  }
  func.func @transform_2(%arg0: i32) -> (i32, i32) {
    %c0_i32 = arith.constant 0 : i32
    %c0_i32_0 = arith.constant 0 : i32
    %c0_i32_1 = arith.constant 0 : i32
    return %c0_i32, %c0_i32_0 : i32, i32
  }
  func.func @transform_3(%arg0: i32) -> (i32, i32) {
    %c0_i32 = arith.constant 0 : i32
    %c0_i32_0 = arith.constant 0 : i32
    %c0_i32_1 = arith.constant 0 : i32
    return %c0_i32, %c0_i32_0 : i32, i32
  }
  func.func @transform_4(%arg0: i32) -> (i32, i32) {
    %c0_i32 = arith.constant 0 : i32
    %c0_i32_0 = arith.constant 0 : i32
    %c0_i32_1 = arith.constant 0 : i32
    return %c0_i32, %c0_i32_0 : i32, i32
  }
  func.func @transform_5(%arg0: i32) -> (i32, i32) {
    %c0_i32 = arith.constant 0 : i32
    %c0_i32_0 = arith.constant 0 : i32
    %c0_i32_1 = arith.constant 0 : i32
    return %c0_i32, %c0_i32_0 : i32, i32
  }
  func.func @transform_6(%arg0: i32) -> (i32, i32, i32) {
    %c0_i32 = arith.constant 0 : i32
    %c0_i32_0 = arith.constant 0 : i32
    %c0_i32_1 = arith.constant 0 : i32
    return %arg0, %c0_i32, %c0_i32_0 : i32, i32, i32
  }
}

</mosaic_0001>

<bundles_post_ra>
// kernel: tpu_custom_call.1
= control target key start
LH: loop header
LB: loop body
LE: loop exit
PB: predicated region body
PF: predicated region fallthrough
CT: control target
= control target key end

     0   :  { %11 = vsyncpa [#allocation5], 0  ;;  %s2132_s0 = inlined_call_operand.hbm [shape: bf16[2,8,384], index: 0, kind: input, shape index: {}]   ;;  %s2133_s1 = inlined_call_operand.hbm [shape: f32[1,8,576], index: 1, kind: input, shape index: {}]   ;;  %s2134_s2 = inlined_call_operand.vmem [shape: bf16[8,72], index: 2, kind: input, shape index: {}]   ;;  %s2135_s3 = inlined_call_operand.vmem [shape: f32[8,1], index: 3, kind: input, shape index: {}]   ;;  %s2136_s4 = inlined_call_operand.vmem [shape: bf16[8,72], index: 4, kind: input, shape index: {}]   ;;  %s2137_s5 = inlined_call_operand.vmem [shape: f32[8,1], index: 5, kind: input, shape index: {}]   ;;  %s2138_s6 = inlined_call_operand.hbm [shape: f32[1,8,576], index: 6, kind: output, shape index: {}]  }
   0x1   :  { %12 = vsyncpa [#allocation8], 0 }
   0x2   :  { %13 = vsyncpa [#allocation6], 0  ;;  %s1654_s21 = smov [#allocation4]   ;;  %s1582_s25 = scalar_lea.hbm %s2132_s0, 384 }
   0x3   :  { %s19_s22 = sshll.u32 %s1654_s21, 4  ;;  %p1583_p0 = scmp.ne.s32.totalorder %s2132_s0, %s1582_s25  ;;  %s20_s22 = int_to_ptr.vmem [resolvable:$true] %s19_s22 }
   0x4   :  { %p1586_p1 = scmp.lt.u32.totalorder %s1582_s25, %s2132_s0 }
   0x6   :  { %p1588_p2 = pnand %p1586_p1, %p1583_p0 }
   0x8   :  { %1591 = shalt.err (!%p1588_p2)
}
   0x9   :  { %s1592_s30 = scalar_lea.vmem %s20_s22, 384  ;;  %p1597_p4 = scmp.lt.s32.totalorder %s20_s22, %s20_s22 }
   0xa   :  { %p1593_p3 = scmp.ne.s32.totalorder %s20_s22, %s1592_s30  ;;  %p1598_p5 = scmp.lt.s32.totalorder %s1592_s30, %s1592_s30 }
   0xc   :  { %p1599_p6 = por %p1598_p5, %p1597_p4 }
   0xe   :  { %p1600_p7 = pnand %p1599_p6, %p1593_p3 }
  0x10   :  { %1603 = shalt.err (!%p1600_p7)
}
  0x11   :  { %s1655_s7 = smov 192   ;;  %s1656_s8 = smov 12  }
  0x12   :  { %25 = dma.hbm_to_vmem [thread:$0]  %s2132_s0, 384, %s20_s22, [#allocation5], %s1655_s7, %s1655_s7, %s1656_s8  }
  0x13   :  { %s1657_s11 = smov [#allocation7]   ;;  %s1604_s15 = scalar_lea.hbm %s2133_s1, 640 }
  0x14   :  { %s32_s12 = sshll.u32 %s1657_s11, 4  ;;  %p1605_p8 = scmp.ne.s32.totalorder %s2133_s1, %s1604_s15  ;;  %s33_s12 = int_to_ptr.vmem [resolvable:$true] %s32_s12 }
  0x15   :  { %p1608_p9 = scmp.lt.u32.totalorder %s1604_s15, %s2133_s1 }
  0x17   :  { %p1610_p10 = pnand %p1608_p9, %p1605_p8 }
  0x19   :  { %1613 = shalt.err (!%p1610_p10)
}
  0x1a   :  { %s1614_s20 = scalar_lea.vmem %s33_s12, 640  ;;  %p1619_p12 = scmp.lt.s32.totalorder %s33_s12, %s33_s12 }
  0x1b   :  { %p1615_p11 = scmp.ne.s32.totalorder %s33_s12, %s1614_s20  ;;  %p1620_p13 = scmp.lt.s32.totalorder %s1614_s20, %s1614_s20 }
  0x1d   :  { %p1621_p0 = por %p1620_p13, %p1619_p12 }
  0x1f   :  { %p1622_p1 = pnand %p1621_p0, %p1615_p11 }
  0x21   :  { %1625 = shalt.err (!%p1622_p1)
}
  0x22   :  { %35 = dma.hbm_to_vmem [thread:$0]  %s2133_s1, 640, %s33_s12, [#allocation8]  }
  0x23   :  { %1648 = dma.done.wait [#allocation5], 384  }
  0x24   :  { %1649 = vsyncadd [#allocation5], 4294966912 }
  0x25   :  { %1650 = dma.done.wait [#allocation8], 640  }
  0x26   :  { %1651 = vsyncadd [#allocation8], 4294966656  ;;  %v1740_v0 = vld [vmem:[#allocation4] sm:$0xff]  ;;  %s1658_s22 = smov 126   ;;  %s1659_s23 = smov 127   ;;  %vm155_vm0 = vcmask 257024  }
  0x27   :  { %179 = vrot.lane.b32.xlu1 %v1740_v0, %s1658_s22  ;;  %161 = vrot.lane.b32.xlu0 %v1740_v0, %s1659_s23  ;;  %v176_v1 = vld [vmem:[#allocation4 + $0x8] sm:$0xf]  ;;  %s1660_s1 = smov 110   ;;  %v315_v5 = vld [vmem:[#allocation4 + $0xc] sm:$0xff]  ;;  %s1661_s24 = smov 31   ;;  %v1672_v13 = vmov 0  }
  0x28   :  { %v158_v2 = vld [vmem:[#allocation4 + $0x8] sm:$0xf]  ;;  %s1662_s25 = smov 32   ;;  %s1663_s26 = smov 109   ;;  %v396_v10 = vld [vmem:[#allocation4 + $0x14] sm:$0xf]  ;;  %649 = vmatprep.mubr.bf16.mxu0 %v1672_v13  ;;  %690 = vmatprep.mubr.bf16.mxu1 %v1672_v13 }
  0x29   :  { %v193_v3 = vld [vmem:[#allocation4 + $0x8] sm:$0xf]  ;;  %s1664_s27 = smov 108   ;;  %s1665_s28 = smov 14   ;;  %v413_v11 = vld [vmem:[#allocation4 + $0x14] sm:$0xf]  ;;  %1544 = vset.pattern.permute.xlu0 %v1672_v13 }
  0x2a   :  { %v153_v4 = vld [vmem:[#allocation4 + $0x8] sm:$0xf]  ;;  %s1666_s29 = smov 30   ;;  %s1667_s30 = smov 92   ;;  %v430_v14 = vld [vmem:[#allocation4 + $0x14] sm:$0xf] }
  0x2b   :  { %181 = vrot.lane.b32.xlu1 %v176_v1, %s1658_s22  ;;  %163 = vrot.lane.b32.xlu0 %v158_v2, %s1659_s23  ;;  %156 = vst.msk [vmem:[#allocation2 + $0x8] sm:$0xf] %vm155_vm0, %v153_v4  ;;  %v210_v6 = vld [vmem:[#allocation4 + $0x8] sm:$0xf]  ;;  %s1668_s7 = smov 91   ;;  %s1669_s9 = smov 13  }
  0x2c   :  { %v227_v7 = vld [vmem:[#allocation4 + $0x8] sm:$0xf]  ;;  %s1670_s10 = smov 124   ;;  %s1671_s11 = smov 123   ;;  %v316_v15 = vld [vmem:[#allocation4 + $0x14] sm:$0xf] }
  0x2d   :  { %v244_v8 = vld [vmem:[#allocation4 + $0x8] sm:$0xf]  ;;  %s1673_s12 = smov 90   ;;  %s1674_s13 = smov 122   ;;  %v296_v16 = vld [vmem:[#allocation4 + $0x14] sm:$0xf] }
  0x2e   :  { %v261_v9 = vld [vmem:[#allocation4 + $0x8] sm:$0xf]  ;;  %v348_v17 = vld [vmem:[#allocation4 + $0x14] sm:$0xf]  ;;  %vm167_vm1 = vcmask 1043456   ;;  %vm169_vm2 = vcmask 1039360  }
  0x2f   :  { %198 = vrot.lane.b32.xlu1 %v193_v3, %s1660_s1  ;;  %196 = vrot.lane.b32.xlu0 %v1740_v0, %s1660_s1  ;;  %v278_v12 = vld [vmem:[#allocation4 + $0x8] sm:$0xf]  ;;  %v332_v18 = vld [vmem:[#allocation4 + $0x14] sm:$0xf]  ;;  %vm186_vm3 = vcmask 1031168   ;;  %vm2144_vm4 = vcmask 900096  }
  0x30   :  { %v380_v19 = vld [vmem:[#allocation4 + $0x14] sm:$0xf]  ;;  %vm309_vm5 = vcmask 1043712   ;;  %vm310_vm6 = vcmask 1047556   ;;  %vm2149_vm7 = vcmask 252928   ;;  %vm304_vm8 = vcmask 261120  }
  0x31   :  { %v364_v20 = vld [vmem:[#allocation4 + $0x14] sm:$0xf]  ;;  %vm1807_vm9 = vmor %vm310_vm6, %vm309_vm5  ;;  %vm2140_vm10 = vcmask 891904   ;;  %vm2139_vm11 = vcmask 883712   ;;  %vm2148_vm12 = vcmask 113664   ;;  %vm2151_vm13 = vcmask 244736  }
  0x32   :  { %v474_v21 = vld [vmem:[%s2135_s3] sm:$0xff]  ;;  %vm2142_vm14 = vcmask 752640   ;;  %vm2141_vm15 = vcmask 744448   ;;  %vm2147_vm5 = vcmask 97280   ;;  %s1678_s17 = smov 115  }
  0x33   :  { %319 = vrot.lane.b32.xlu1 %v315_v5, %s1661_s24  ;;  %299 = vrot.lane.b32.xlu0 %v315_v5, %s1662_s25 }
  0x37   :  { %215 = vrot.lane.b32.xlu1 %v210_v6, %s1663_s26  ;;  %213 = vrot.lane.b32.xlu0 %v1740_v0, %s1663_s26 }
  0x3b   :  { %232 = vrot.lane.b32.xlu1 %v227_v7, %s1664_s27  ;;  %230 = vrot.lane.b32.xlu0 %v1740_v0, %s1664_s27 }
  0x3f   :  { %351 = vrot.lane.b32.xlu1 %v315_v5, %s1665_s28  ;;  %335 = vrot.lane.b32.xlu0 %v315_v5, %s1666_s29 }
  0x43   :  { %249 = vrot.lane.b32.xlu1 %v244_v8, %s1667_s30  ;;  %247 = vrot.lane.b32.xlu0 %v1740_v0, %s1667_s30 }
  0x47   :  { %266 = vrot.lane.b32.xlu1 %v261_v9, %s1668_s7  ;;  %264 = vrot.lane.b32.xlu0 %v1740_v0, %s1668_s7 }
  0x4b   :  { %383 = vrot.lane.b32.xlu1 %v315_v5, %s1656_s8  ;;  %367 = vrot.lane.b32.xlu0 %v315_v5, %s1669_s9 }
  0x4f   :  { %401 = vrot.lane.b32.xlu1 %v396_v10, %s1670_s10  ;;  %399 = vrot.lane.b32.xlu0 %v315_v5, %s1670_s10 }
  0x53   :  { %418 = vrot.lane.b32.xlu1 %v413_v11, %s1671_s11  ;;  %416 = vrot.lane.b32.xlu0 %v315_v5, %s1671_s11 }
  0x57   :  { %283 = vrot.lane.b32.xlu1 %v278_v12, %s1673_s12  ;;  %281 = vrot.lane.b32.xlu0 %v1740_v0, %s1673_s12 }
  0x5b   :  { %435 = vrot.lane.b32.xlu1 %v430_v14, %s1674_s13  ;;  %433 = vrot.lane.b32.xlu0 %v315_v5, %s1674_s13 }
  0x5f   :  { %321 = vrot.lane.b32.xlu1 %v316_v15, %s1661_s24  ;;  %301 = vrot.lane.b32.xlu0 %v296_v16, %s1662_s25 }
  0x63   :  { %353 = vrot.lane.b32.xlu1 %v348_v17, %s1665_s28  ;;  %337 = vrot.lane.b32.xlu0 %v332_v18, %s1666_s29 }
  0x67   :  { %385 = vrot.lane.b32.xlu1 %v380_v19, %s1656_s8  ;;  %369 = vrot.lane.b32.xlu0 %v364_v20, %s1669_s9 }
  0x6b   :  { %477 = vperm.xlu0 %1544, %v474_v21  }
  0x99   :  { %v180_v22 = vpop.permute.xlu1 %179  ;;  %v162_v23 = vpop.permute.xlu0 %161 }
  0x9a   :  { %v165_v26 = vrot.slane %v162_v23, 4  ;;  %v183_v29 = vrot.slane %v180_v22, 4 }
  0x9d   :  { %v182_v24 = vpop.permute.xlu1 %181  ;;  %v164_v25 = vpop.permute.xlu0 %163 }
  0x9e   :  { %v184_v27 = vrot.slane %v182_v24, 4  ;;  %191 = vst.msk [vmem:[#allocation2 + $0x30] sm:$0xf] %vm155_vm0, %v182_v24  ;;  %v166_v28 = vrot.slane %v164_v25, 4  ;;  %174 = vst.msk [vmem:[#allocation2 + $0x1c] sm:$0xf] %vm155_vm0, %v164_v25 }
  0xa0   :  { %v168_v30 = vsel %vm167_vm1, %v165_v26, %v166_v28  ;;  %v185_v31 = vsel %vm167_vm1, %v183_v29, %v184_v27 }
  0xa1   :  { %v170_v32 = vsel %vm169_vm2, %v162_v23, %v168_v30  ;;  %v199_v33 = vpop.permute.xlu1 %198  ;;  %v197_v34 = vpop.permute.xlu0 %196  ;;  %v187_v40 = vsel %vm186_vm3, %v180_v22, %v185_v31 }
  0xa2   :  { %v201_v35 = vrot.slane %v199_v33, 4  ;;  %208 = vst.msk [vmem:[#allocation2 + $0x44] sm:$0xf] %vm155_vm0, %v199_v33  ;;  %v200_v36 = vrot.slane %v197_v34, 4  ;;  %v1401_v37 = vcombine.high %v1740_v0, %v170_v32  ;;  %v1400_v38 = vcombine.low %v1740_v0, %v170_v32 }
  0xa4   :  { %v202_v39 = vsel %vm167_vm1, %v200_v36, %v201_v35  ;;  %617 = vmatprep.subr.bf16.mxu0 %v1401_v37 }
  0xa5   :  { %v204_v41 = vsel %vm2144_vm4, %v197_v34, %v202_v39  ;;  %v1802_v42 = vpop.permute.xlu1 %319  ;;  %v1804_v43 = vpop.permute.xlu0 %299  ;;  %618 = vmatpush1.bf16.msra.mxu0 %v1400_v38  ;;  %vm2146_vm4 = vcmask 998400  }
  0xa6   :  { %v323_v45 = vrot.slane %v1802_v42, 4  ;;  %v303_v46 = vrot.slane %v1804_v43, 4  ;;  %v1406_v47 = vcombine.high %v187_v40, %v204_v41  ;;  %v1405_v48 = vcombine.low %v187_v40, %v204_v41 }
  0xa8   :  { %v325_v49 = vsel %vm2149_vm7, %v323_v45, %v1802_v42  ;;  %v305_v50 = vsel %vm304_vm8, %v303_v46, %v1804_v43  ;;  %619 = vmatprep.subr.bf16.mxu0 %v1406_v47 }
  0xa9   :  { %329 = vst.msk [vmem:[#allocation2 + $0x1c] sm:$0xff] %vm1807_vm9, %v325_v49  ;;  %312 = vst.msk [vmem:[#allocation2 + $0x8] sm:$0xff] %vm1807_vm9, %v305_v50  ;;  %v216_v51 = vpop.permute.xlu1 %215  ;;  %v214_v52 = vpop.permute.xlu0 %213  ;;  %620 = vmatpush1.bf16.msra.mxu0 %v1405_v48 }
  0xaa   :  { %v218_v53 = vrot.slane %v216_v51, 4  ;;  %225 = vst.msk [vmem:[#allocation2 + $0x58] sm:$0xf] %vm155_vm0, %v216_v51  ;;  %v217_v54 = vrot.slane %v214_v52, 4 }
  0xac   :  { %v219_v57 = vsel %vm167_vm1, %v217_v54, %v218_v53 }
  0xad   :  { %v233_v55 = vpop.permute.xlu1 %232  ;;  %v231_v56 = vpop.permute.xlu0 %230  ;;  %v221_v62 = vsel %vm2140_vm10, %v214_v52, %v219_v57  ;;  %vm2154_vm10 = vcmask 519168  }
  0xae   :  { %v235_v58 = vrot.slane %v233_v55, 4  ;;  %242 = vst.msk [vmem:[#allocation2 + $0x6c] sm:$0xf] %vm155_vm0, %v233_v55  ;;  %v234_v59 = vrot.slane %v231_v56, 4 }
  0xb0   :  { %v236_v60 = vsel %vm167_vm1, %v234_v59, %v235_v58  ;;  %v1545_v61 = vld [vmem:[#allocation2 + $0xc] ss:$20 sps:$4 sm:$0xff]   ;;  %v1547_v2 = vld [vmem:[#allocation2 + $0x8] ss:$20 sps:$4 sm:$0xff]  }
  0xb1   :  { %v238_v63 = vsel %vm2139_vm11, %v231_v56, %v236_v60  ;;  %v1831_v0 = vpop.permute.xlu1 %351  ;;  %v1833_v1 = vpop.permute.xlu0 %335  ;;  %658 = vmatprep.subr.bf16.mxu1 %v1545_v61  ;;  %vm2150_vm11 = vcmask 105472  }
  0xb2   :  { %v355_v3 = vrot.slane %v1831_v0, 4  ;;  %v339_v4 = vrot.slane %v1833_v1, 4  ;;  %v1411_v5 = vcombine.high %v221_v62, %v238_v63  ;;  %v1410_v6 = vcombine.low %v221_v62, %v238_v63  ;;  %659 = vmatpush1.bf16.msra.mxu1 %v1547_v2 }
  0xb4   :  { %v357_v7 = vsel %vm2148_vm12, %v355_v3, %v1831_v0  ;;  %v341_v8 = vsel %vm2151_vm13, %v339_v4, %v1833_v1  ;;  %621 = vmatprep.subr.bf16.mxu0 %v1411_v5  ;;  %v446_v5 = vld [vmem:[%s2134_s2] sm:$0xf]  ;;  %s1677_s2 = smov 19  }
  0xb5   :  { %361 = vst.msk [vmem:[#allocation2 + $0x44] sm:$0xff] %vm1807_vm9, %v357_v7  ;;  %345 = vst.msk [vmem:[#allocation2 + $0x30] sm:$0xff] %vm1807_vm9, %v341_v8  ;;  %v250_v9 = vpop.permute.xlu1 %249  ;;  %v248_v10 = vpop.permute.xlu0 %247  ;;  %622 = vmatpush1.bf16.msra.mxu0 %v1410_v6 }
  0xb6   :  { %v252_v11 = vrot.slane %v250_v9, 4  ;;  %259 = vst.msk [vmem:[#allocation2 + $0x80] sm:$0xf] %vm155_vm0, %v250_v9  ;;  %v251_v12 = vrot.slane %v248_v10, 4 }
  0xb8   :  { %v253_v16 = vsel %vm167_vm1, %v251_v12, %v252_v11 }
  0xb9   :  { %v267_v14 = vpop.permute.xlu1 %266  ;;  %v265_v15 = vpop.permute.xlu0 %264  ;;  %v255_v21 = vsel %vm2142_vm14, %v248_v10, %v253_v16  ;;  %vm2145_vm14 = vcmask 1006592   ;;  %v1675_v16 = vmov 0.0  }
  0xba   :  { %v269_v17 = vrot.slane %v267_v14, 4  ;;  %276 = vst.msk [vmem:[#allocation2 + $0x94] sm:$0xf] %vm155_vm0, %v267_v14  ;;  %v268_v18 = vrot.slane %v265_v15, 4 }
  0xbc   :  { %v270_v19 = vsel %vm167_vm1, %v268_v18, %v269_v17  ;;  %v1548_v20 = vld [vmem:[#allocation2 + $0x34] ss:$20 sps:$4 sm:$0xff]   ;;  %v1550_v25 = vld [vmem:[#allocation2 + $0x30] ss:$20 sps:$4 sm:$0xff]  }
  0xbd   :  { %v272_v22 = vsel %vm2141_vm15, %v265_v15, %v270_v19  ;;  %v1855_v23 = vpop.permute.xlu1 %383  ;;  %v1857_v24 = vpop.permute.xlu0 %367  ;;  %660 = vmatprep.subr.bf16.mxu1 %v1548_v20  ;;  %vm2143_vm15 = vcmask 1014784  }
  0xbe   :  { %v387_v26 = vrot.slane %v1855_v23, 4  ;;  %v371_v27 = vrot.slane %v1857_v24, 4  ;;  %v1416_v28 = vcombine.high %v255_v21, %v272_v22  ;;  %v1415_v29 = vcombine.low %v255_v21, %v272_v22  ;;  %661 = vmatpush1.bf16.msra.mxu1 %v1550_v25 }
  0xc0   :  { %v389_v30 = vsel %vm2147_vm5, %v387_v26, %v1855_v23  ;;  %v373_v31 = vsel %vm2150_vm11, %v371_v27, %v1857_v24  ;;  %623 = vmatprep.subr.bf16.mxu0 %v1416_v28 }
  0xc1   :  { %393 = vst.msk [vmem:[#allocation2 + $0x6c] sm:$0xff] %vm1807_vm9, %v389_v30  ;;  %377 = vst.msk [vmem:[#allocation2 + $0x58] sm:$0xff] %vm1807_vm9, %v373_v31  ;;  %v402_v32 = vpop.permute.xlu1 %401  ;;  %v400_v33 = vpop.permute.xlu0 %399  ;;  %624 = vmatpush1.bf16.msra.mxu0 %v1415_v29 }
  0xc2   :  { %v404_v34 = vrot.slane %v402_v32, 4  ;;  %411 = vst.msk [vmem:[#allocation2 + $0x88] sm:$0xf] %vm2154_vm10, %v402_v32  ;;  %v403_v35 = vrot.slane %v400_v33, 4 }
  0xc4   :  { %v405_v36 = vsel %vm167_vm1, %v403_v35, %v404_v34 }
  0xc5   :  { %v407_v37 = vsel %vm2143_vm15, %v400_v33, %v405_v36  ;;  %v419_v38 = vpop.permute.xlu1 %418  ;;  %v417_v39 = vpop.permute.xlu0 %416  ;;  %vm288_vm15 = vcmask 736256  }
  0xc6   :  { %410 = vst.msk [vmem:[#allocation2 + $0x80] sm:$0xff] %vm1807_vm9, %v407_v37  ;;  %v421_v40 = vrot.slane %v419_v38, 4  ;;  %v420_v41 = vrot.slane %v417_v39, 4 }
  0xc7   :  { %428 = vst.msk [vmem:[#allocation2 + $0x9c] sm:$0xf] %vm2154_vm10, %v419_v38 }
  0xc8   :  { %v422_v47 = vsel %vm167_vm1, %v420_v41, %v421_v40  ;;  %v1551_v48 = vld [vmem:[#allocation2 + $0x5c] ss:$20 sps:$4 sm:$0xff]   ;;  %v1553_v52 = vld [vmem:[#allocation2 + $0x58] ss:$20 sps:$4 sm:$0xff]  }
  0xc9   :  { %v424_v49 = vsel %vm2145_vm14, %v417_v39, %v422_v47  ;;  %v284_v50 = vpop.permute.xlu1 %283  ;;  %v282_v51 = vpop.permute.xlu0 %281  ;;  %662 = vmatprep.subr.bf16.mxu1 %v1551_v48  ;;  %vm2153_vm14 = vcmask 588800  }
  0xca   :  { %427 = vst.msk [vmem:[#allocation2 + $0x94] sm:$0xff] %vm1807_vm9, %v424_v49  ;;  %v286_v53 = vrot.slane %v284_v50, 4  ;;  %v285_v54 = vrot.slane %v282_v51, 4  ;;  %663 = vmatpush1.bf16.msra.mxu1 %v1553_v52 }
  0xcb   :  { %293 = vst.msk [vmem:[#allocation2 + $0xa8] sm:$0xf] %vm155_vm0, %v284_v50 }
  0xcc   :  { %v287_v55 = vsel %vm167_vm1, %v285_v54, %v286_v53 }
  0xcd   :  { %v289_v56 = vsel %vm288_vm15, %v282_v51, %v287_v55  ;;  %v436_v57 = vpop.permute.xlu1 %435  ;;  %v434_v58 = vpop.permute.xlu0 %433  ;;  %v466_v9 = vld [vmem:[#allocation2 + $0x80] sm:$0xff] }
  0xce   :  { %v438_v59 = vrot.slane %v436_v57, 4  ;;  %445 = vst.msk [vmem:[#allocation2 + $0xb0] sm:$0xf] %vm2154_vm10, %v436_v57  ;;  %v437_v60 = vrot.slane %v434_v58, 4  ;;  %v1421_v61 = vcombine.high %v289_v56, %v289_v56  ;;  %v1420_v62 = vcombine.low %v289_v56, %v289_v56  ;;  %v1561_v24 = vld [vmem:[#allocation2 + $0x88] ss:$20 sps:$4 sm:$0xff]  }
  0xd0   :  { %v439_v63 = vsel %vm167_vm1, %v437_v60, %v438_v59  ;;  %1425 = vmatprep.subr.msk.bf16.mxu0 %vm167_vm1, %v1421_v61  ;;  %v603_v2 = vsel %vm167_vm1, %v1420_v62, 0 }
  0xd1   :  { %v441_v6 = vsel %vm2146_vm4, %v434_v58, %v439_v63  ;;  %v322_v7 = vpop.permute.xlu1 %321  ;;  %v302_v8 = vpop.permute.xlu0 %301  ;;  %v469_v10 = vld [vmem:[#allocation2 + $0x94] sm:$0xff]  ;;  %626 = vmatpush1.bf16.msra.mxu0 %v603_v2  ;;  %vm2152_vm4 = vmmov 0  }
  0xd2   :  { %v1554_v11 = vld [vmem:[#allocation2 + $0x84] ss:$20 sps:$4 sm:$0xff]   ;;  %444 = vst.msk [vmem:[#allocation2 + $0xa8] sm:$0xff] %vm1807_vm9, %v441_v6  ;;  %v326_v12 = vsel %vm2149_vm7, %v323_v45, %v322_v7  ;;  %v306_v14 = vsel %vm304_vm8, %v303_v46, %v302_v8  ;;  %v1417_v15 = vcombine.low %v466_v9, %v469_v10  ;;  %1480 = vmatprep.subr.bf16.mxu0 %v1675_v16 }
  0xd3   :  { %330 = vst.msk [vmem:[#allocation2 + $0x24] sm:$0xf] %vm2154_vm10, %v326_v12  ;;  %314 = vst.msk [vmem:[#allocation2 + $0x10] sm:$0xf] %vm2154_vm10, %v306_v14  ;;  %664 = vmatprep.subr.bf16.mxu1 %v1554_v11 }
  0xd4   :  { %665 = vmatpush1.bf16.msra.mxu1 %v1417_v15  ;;  %1426 = vmatmul.mubr.msk.bf16.vlgmr.msra.gmra.mrb[0].mxu0 %vm2153_vm14, %v446_v5 }
  0xd5   :  { %v354_v17 = vpop.permute.xlu1 %353  ;;  %v338_v42 = vpop.permute.xlu0 %337  ;;  %1490 = vmatprep.mubr.msk.bf16.mxu0 %vm2152_vm4, %v1675_v16  ;;  %v1562_v25 = vld [vmem:[#allocation2 + $0xb0] ss:$0 sps:$4 sm:$0xff]  }
  0xd6   :  { %v358_v43 = vsel %vm2148_vm12, %v355_v3, %v354_v17  ;;  %v342_v45 = vsel %vm2151_vm13, %v339_v4, %v338_v42 }
  0xd7   :  { %362 = vst.msk [vmem:[#allocation2 + $0x4c] sm:$0xf] %vm2154_vm10, %v358_v43  ;;  %346 = vst.msk [vmem:[#allocation2 + $0x38] sm:$0xf] %vm2154_vm10, %v342_v45 }
  0xd9   :  { %v386_v46 = vpop.permute.xlu1 %385  ;;  %v370_v18 = vpop.permute.xlu0 %369  ;;  %v472_v19 = vld [vmem:[#allocation2 + $0xa8] sm:$0xff] }
  0xda   :  { %v390_v20 = vsel %vm2147_vm5, %v387_v26, %v386_v46  ;;  %v374_v0 = vsel %vm2150_vm11, %v371_v27, %v370_v18  ;;  %v1423_v3 = vcombine.high %v472_v19, %v472_v19  ;;  %v1422_v21 = vcombine.low %v472_v19, %v472_v19  ;;  %v1558_v1 = vld [vmem:[#allocation2 + $0x10] ss:$20 sps:$4 sm:$0xff]  }
  0xdb   :  { %394 = vst.msk [vmem:[#allocation2 + $0x74] sm:$0xf] %vm2154_vm10, %v390_v20  ;;  %378 = vst.msk [vmem:[#allocation2 + $0x60] sm:$0xf] %vm2154_vm10, %v374_v0  ;;  %1481 = vmatpush3.bf16.msra.mxu0 %v1558_v1  ;;  %v615_v26 = vsel %vm167_vm1, %v1562_v25, 0  ;;  %vm754_vm5 = vcmask 150528   ;;  %v51_v27 = vlaneseq }
  0xdc   :  { %1427 = vmatprep.subr.msk.bf16.mxu1 %vm167_vm1, %v1423_v3  ;;  %v609_v4 = vsel %vm167_vm1, %v1422_v21, 0  ;;  %1482 = vmatprep.subr.bf16.mxu0 %v1675_v16  ;;  %755 = vst.msk [vmem:[#allocation3] sm:$0xf] %vm754_vm5, %v1672_v13  ;;  %781 = vst.msk [vmem:[#allocation3 + $0xc] sm:$0xf] %vm754_vm5, %v1672_v13 }
  0xdd   :  { %667 = vmatpush1.bf16.msra.mxu1 %v609_v4  ;;  %v52_v28 = vand.u32 127, %v51_v27 }
  0xde   :  { %v1559_v22 = vld [vmem:[#allocation2 + $0x38] ss:$20 sps:$4 sm:$0xff]  }
  0xdf   :  { %1483 = vmatpush3.bf16.msra.mxu0 %v1559_v22  ;;  %v53_v29 = vadd.s32 128, %v52_v28  ;;  %v1937_v30 = vmul.u32.u64.low 3817748708, %v52_v28  ;;  %v1938_v31 = vmul.u32.u64.high 3817748708, %v52_v28, %v1937_v30  ;;  %v54_v35 = vadd.s32 256, %v52_v28 }
  0xe0   :  { %1428 = vmatmul.mubr.msk.bf16.vlgmr.msra.gmra.mrb[0].mxu1 %vm2153_vm14, %v446_v5  ;;  %1484 = vmatprep.subr.bf16.mxu0 %v1675_v16  ;;  %v55_v37 = vadd.s32 384, %v52_v28  ;;  %v56_v55 = vadd.s32 512, %v52_v28 }
  0xe1   :  { %1273 = vmatprep.mubr.bf16.mxu1 %v1672_v13  ;;  %v1940_v32 = vmul.u32.u64.low 3817748708, %v53_v29  ;;  %v1941_v33 = vmul.u32.u64.high 3817748708, %v53_v29, %v1940_v32  ;;  %v63_v34 = vshrl.u32 %v1938_v31, 4 }
  0xe2   :  { %v1560_v23 = vld [vmem:[#allocation2 + $0x60] ss:$20 sps:$4 sm:$0xff]   ;;  %v1945_v39 = vmul.u32.u64.low 3817748708, %v54_v35  ;;  %v1946_v40 = vmul.u32.u64.high 3817748708, %v54_v35, %v1945_v39  ;;  %v1948_v47 = vmul.u32.u64.low 3817748708, %v55_v37  ;;  %v1949_v48 = vmul.u32.u64.high 3817748708, %v55_v37, %v1948_v47 }
  0xe3   :  { %1485 = vmatpush3.bf16.msra.mxu0 %v1560_v23  ;;  %v74_v36 = vshrl.u32 %v1941_v33, 4  ;;  %v64_v38 = vmul.u32 18, %v63_v34  ;;  %v1953_v60 = vmul.u32.u64.low 3817748708, %v56_v55  ;;  %v1954_v61 = vmul.u32.u64.high 3817748708, %v56_v55, %v1953_v60 }
  0xe4   :  { %1486 = vmatprep.subr.bf16.mxu0 %v1675_v16  ;;  %v85_v51 = vshrl.u32 %v1946_v40, 4  ;;  %v96_v52 = vshrl.u32 %v1949_v48, 4 }
  0xe5   :  { %v75_v41 = vmul.u32 18, %v74_v36  ;;  %v65_v49 = vsub.s32 %v52_v28, %v64_v38  ;;  %v107_v45 = vshrl.u32 %v1954_v61, 4 }
  0xe6   :  { %v86_v56 = vmul.u32 18, %v85_v51  ;;  %v97_v57 = vmul.u32 18, %v96_v52 }
  0xe7   :  { %1487 = vmatpush3.bf16.msra.mxu0 %v1561_v24  ;;  %v76_v50 = vsub.s32 %v53_v29, %v75_v41  ;;  %vm112_vm5 = vcmp.ne.s32.totalorder %v65_v49, 0  ;;  %vm117_vm12 = vcmp.lt.s32.totalorder %v65_v49, 0  ;;  %v127_v53 = vadd.s32 18, %v65_v49 }
  0xe8   :  { %1488 = vmatprep.subr.bf16.mxu0 %v1675_v16  ;;  %vm122_vm13 = vmand %vm117_vm12, %vm112_vm5  ;;  %v87_v63 = vsub.s32 %v54_v35, %v86_v56  ;;  %v98_v2 = vsub.s32 %v55_v37, %v97_v57  ;;  %v108_v0 = vmul.u32 18, %v107_v45  ;;  %v1100_v45 = vld [vmem:[%s2137_s5] sm:$0xff] }
  0xe9   :  { %vm113_vm7 = vcmp.ne.s32.totalorder %v76_v50, 0  ;;  %vm118_vm11 = vcmp.lt.s32.totalorder %v76_v50, 0  ;;  %v128_v54 = vadd.s32 18, %v76_v50  ;;  %v132_v58 = vsel %vm122_vm13, %v127_v53, %v65_v49 }
  0xea   :  { %vm123_vm4 = vmand %vm118_vm11, %vm113_vm7  ;;  %v478_v62 = vpop.permute.xlu0 %477  ;;  %vm114_vm7 = vcmp.ne.s32.totalorder %v87_v63, 0  ;;  %vm119_vm11 = vcmp.lt.s32.totalorder %v87_v63, 0  ;;  %vm120_vm12 = vcmp.lt.s32.totalorder %v98_v2, 0  ;;  %v129_v17 = vadd.s32 18, %v87_v63 }
  0xeb   :  { %1489 = vmatpush3.bf16.msra.mxu0 %v615_v26  ;;  %v133_v59 = vsel %vm123_vm4, %v128_v54, %v76_v50  ;;  %vm115_vm4 = vcmp.ne.s32.totalorder %v98_v2, 0  ;;  %vm124_vm13 = vmand %vm119_vm11, %vm114_vm7  ;;  %v130_v43 = vadd.s32 18, %v98_v2  ;;  %v109_v4 = vsub.s32 %v56_v55, %v108_v0 }
  0xec   :  { %vm138_vm10 = vcmp.lt.s32.totalorder %v133_v59, 16  ;;  %vm125_vm5 = vmand %vm120_vm12, %vm115_vm4  ;;  %v134_v18 = vsel %vm124_vm13, %v129_v17, %v87_v63  ;;  %vm774_vm13 = vcmask 1043608  }
  0xed   :  { %v1396_v12 = vsel %vm138_vm10, 1.0, %v1675_v16  ;;  %v135_v20 = vsel %vm125_vm5, %v130_v43, %v98_v2  ;;  %vm116_vm7 = vcmp.ne.s32.totalorder %v109_v4, 0  ;;  %vm121_vm11 = vcmp.lt.s32.totalorder %v109_v4, 0 }
  0xee   :  { %1491 = vmatmul.mubr.msk.bf16.vlgmr.msra.gmra.mrb[4].mxu0 %vm2153_vm14, %v446_v5  ;;  %vm137_vm14 = vcmp.lt.s32.totalorder %v132_v58, 16  ;;  %vm140_vm10 = vcmp.lt.s32.totalorder %v135_v20, 16  ;;  %v131_v32 = vadd.s32 18, %v109_v4  ;;  %vm126_vm4 = vmand %vm121_vm11, %vm116_vm7  ;;  %vm769_vm5 = vcmask 154624  }
  0xef   :  { %1314 = vmatprep.mubr.bf16.mxu0 %v1672_v13  ;;  %v1395_v8 = vsel %vm137_vm14, 1.0, %v1675_v16  ;;  %vm139_vm14 = vcmp.lt.s32.totalorder %v134_v18, 16  ;;  %v1398_v26 = vsel %vm140_vm10, 1.0, %v1675_v16  ;;  %vm777_vm10 = vcmask 412672  }
  0xf0   :  { %v1397_v22 = vsel %vm139_vm14, 1.0, %v1675_v16  ;;  %v136_v34 = vsel %vm126_vm4, %v131_v32, %v109_v4  ;;  %vm1963_vm14 = vmor %vm310_vm6, %vm774_vm13  ;;  %vm779_vm7 = vcmask 1043864   ;;  %vm795_vm6 = vcmask 941056  }
  0xf1   :  { %vm141_vm12 = vcmp.lt.s32.totalorder %v136_v34, 16  ;;  %vm2161_vm11 = vcmask 883712   ;;  %vm2162_vm4 = vcmask 752640   ;;  %vm2166_vm13 = vmmov 0  }
  0xf2   :  { %v1399_v38 = vsel %vm141_vm12, 1.0, %v1675_v16  ;;  %vm2163_vm12 = vcmask 744448  }
 0x1a7   :  { %v651_v5 = vpop.f32.mrb[0].mxu0 }
 0x1a8   :  { %v652_v6 = vadd.f32 %v651_v5, %v478_v62  ;;  %v653_v7 = vpop.f32.mrb[1].mxu0 }
 0x1a9   :  { %v654_v9 = vadd.f32 %v653_v7, %v478_v62  ;;  %v655_v10 = vpop.f32.mrb[2].mxu0 }
 0x1aa   :  { %v739_v11 = vmax.f32 %v652_v6, 0.0  ;;  %v656_v14 = vpop.f32.mrb[3].mxu0 }
 0x1ab   :  { %v740_v15 = vmax.f32 %v654_v9, 0.0 }
 0x1ac   :  { %v744_v42 = vmul.f32 %v1395_v8, %v739_v11 }
 0x1ad   :  { %v745_v46 = vmul.f32 %v1396_v12, %v740_v15 }
 0x1af   :  { %v1464_v19 = vpack.c.bf16 %v745_v46, %v744_v42 }
 0x1b1   :  { %764 = vrot.lane.b32.xlu1 %v1464_v19, %s1677_s2 }
 0x1b3   :  { %v692_v3 = vpop.f32.mrb[0].mxu1 }
 0x1b4   :  { %v693_v21 = vadd.f32 %v692_v3, %v478_v62  ;;  %v694_v1 = vpop.f32.mrb[1].mxu1 }
 0x1b5   :  { %v695_v23 = vadd.f32 %v694_v1, %v478_v62  ;;  %v696_v24 = vpop.f32.mrb[2].mxu1 }
 0x1b6   :  { %v741_v25 = vmax.f32 %v693_v21, 0.0  ;;  %v697_v27 = vpop.f32.mrb[3].mxu1 }
 0x1b7   :  { %v742_v28 = vmax.f32 %v695_v23, 0.0 }
 0x1b8   :  { %v746_v29 = vmul.f32 %v1397_v22, %v741_v25 }
 0x1b9   :  { %v747_v30 = vmul.f32 %v1398_v26, %v742_v28 }
 0x1ba   :  { %v1465_v31 = vpack.c.bf16 %v746_v29, %v746_v29 }
 0x1bb   :  { %v1466_v33 = vpack.c.bf16 %v747_v30, %v746_v29 }
 0x1bc   :  { %766 = vrot.lane.b32.xlu1 %v1465_v31, %s1677_s2 }
 0x1bd   :  { %788 = vrot.lane.b32.xlu0 %v1466_v33, %s1678_s17 }
 0x1c1   :  { %v733_v35 = vpop.f32.mrb[4].mxu0 }
 0x1c2   :  { %v734_v36 = vadd.f32 %v733_v35, %v478_v62  ;;  %v1492_v37 = vpop.f32.mrb[5].mxu0 }
 0x1c3   :  { %v736_v39 = vpop.f32.mrb[6].mxu0 }
 0x1c4   :  { %v743_v40 = vmax.f32 %v734_v36, 0.0  ;;  %v1493_v41 = vpop.f32.mrb[7].mxu0 }
 0x1c6   :  { %v748_v47 = vmul.f32 %v1399_v38, %v743_v40 }
 0x1c8   :  { %v1467_v48 = vpack.c.bf16 %v748_v47, %v748_v47 }
 0x1ca   :  { %790 = vrot.lane.b32.xlu1 %v1467_v48, %s1678_s17 }
 0x223   :  { %v765_v49 = vpop.permute.xlu1 %764 }
 0x224   :  { %v768_v51 = vrot.slane %v765_v49, 4 }
 0x226   :  { %v770_v52 = vsel %vm769_vm5, %v768_v51, %v765_v49 }
 0x227   :  { %776 = vst.msk [vmem:[#allocation3] sm:$0xff] %vm1963_vm14, %v770_v52 }
 0x22e   :  { %v1969_v53 = vld [vmem:[#allocation3] sm:$0xff]  ;;  %v767_v54 = vpop.permute.xlu1 %766 }
 0x22f   :  { %v771_v55 = vsel %vm769_vm5, %v768_v51, %v767_v54  ;;  %810 = vrot.lane.b32.xlu0 %v1969_v53, %s1659_s23  ;;  %v789_v58 = vpop.permute.xlu0 %788 }
 0x230   :  { %778 = vst.msk [vmem:[#allocation3 + $0x8] sm:$0xf] %vm777_vm10, %v771_v55  ;;  %v792_v60 = vrot.slane %v789_v58, 4 }
 0x231   :  { %780 = vst.msk [vmem:[#allocation3 + $0x8] sm:$0xf] %vm779_vm7, %v1672_v13 }
 0x233   :  { %826 = vrot.lane.b32.xlu0 %v1969_v53, %s1658_s22 }
 0x237   :  { %842 = vrot.lane.b32.xlu0 %v1969_v53, %s1660_s1 }
 0x238   :  { %v807_v56 = vld [vmem:[#allocation3 + $0x8] sm:$0xf] }
 0x239   :  { %812 = vrot.lane.b32.xlu1 %v807_v56, %s1659_s23  ;;  %v823_v57 = vld [vmem:[#allocation3 + $0x8] sm:$0xf] }
 0x23a   :  { %v839_v62 = vld [vmem:[#allocation3 + $0x8] sm:$0xf] }
 0x23b   :  { %858 = vrot.lane.b32.xlu0 %v1969_v53, %s1663_s26  ;;  %v855_v5 = vld [vmem:[#allocation3 + $0x8] sm:$0xf] }
 0x23c   :  { %v791_v59 = vpop.permute.xlu1 %790  ;;  %v871_v6 = vld [vmem:[#allocation3 + $0x8] sm:$0xf] }
 0x23d   :  { %828 = vrot.lane.b32.xlu1 %v823_v57, %s1658_s22  ;;  %v793_v61 = vrot.slane %v791_v59, 4  ;;  %800 = vst.msk [vmem:[#allocation3 + $0x14] sm:$0xf] %vm777_vm10, %v791_v59  ;;  %v903_v8 = vld [vmem:[#allocation3 + $0x8] sm:$0xf] }
 0x23e   :  { %801 = vst.msk [vmem:[#allocation3 + $0x14] sm:$0xf] %vm779_vm7, %v1672_v13  ;;  %v887_v13 = vld [vmem:[#allocation3 + $0x8] sm:$0xf] }
 0x23f   :  { %874 = vrot.lane.b32.xlu0 %v1969_v53, %s1664_s27  ;;  %v794_v63 = vsel %vm167_vm1, %v792_v60, %v793_v61  ;;  %v803_v10 = vld [vmem:[#allocation3 + $0x8] sm:$0xf] }
 0x240   :  { %v796_v2 = vsel %vm795_vm6, %v789_v58, %v794_v63  ;;  %805 = vst.msk [vmem:[#allocation2 + $0x8] sm:$0xf] %vm155_vm0, %v803_v10  ;;  %v919_v11 = vld [vmem:[#allocation3 + $0x8] sm:$0xf]  ;;  %vm2172_vm6 = vcmask 105472  }
 0x241   :  { %844 = vrot.lane.b32.xlu1 %v839_v62, %s1660_s1  ;;  %799 = vst.msk [vmem:[#allocation3 + $0xc] sm:$0xff] %vm1963_vm14, %v796_v2  ;;  %vm2168_vm14 = vcmask 244736  }
 0x243   :  { %890 = vrot.lane.b32.xlu0 %v1969_v53, %s1667_s30 }
 0x245   :  { %860 = vrot.lane.b32.xlu1 %v855_v5, %s1663_s26  ;;  %v935_v7 = vld [vmem:[#allocation3 + $0x14] sm:$0xf] }
 0x246   :  { %v965_v9 = vld [vmem:[#allocation3 + $0x14] sm:$0xf] }
 0x247   :  { %906 = vrot.lane.b32.xlu0 %v1969_v53, %s1668_s7  ;;  %v995_v12 = vld [vmem:[#allocation3 + $0x14] sm:$0xf] }
 0x248   :  { %v950_v14 = vld [vmem:[#allocation3 + $0x14] sm:$0xf]  ;;  %v934_v17 = vld [vmem:[#allocation3 + $0xc] sm:$0xff] }
 0x249   :  { %876 = vrot.lane.b32.xlu1 %v871_v6, %s1664_s27  ;;  %v980_v15 = vld [vmem:[#allocation3 + $0x14] sm:$0xf] }
 0x24a   :  { %v1025_v42 = vld [vmem:[#allocation3 + $0x14] sm:$0xf] }
 0x24b   :  { %922 = vrot.lane.b32.xlu0 %v1969_v53, %s1673_s12  ;;  %v1041_v43 = vld [vmem:[#allocation3 + $0x14] sm:$0xf] }
 0x24c   :  { %v1010_v46 = vld [vmem:[#allocation3 + $0x14] sm:$0xf] }
 0x24d   :  { %892 = vrot.lane.b32.xlu1 %v887_v13, %s1667_s30  ;;  %v1057_v18 = vld [vmem:[#allocation3 + $0x14] sm:$0xf] }
 0x24f   :  { %940 = vrot.lane.b32.xlu0 %v935_v7, %s1662_s25 }
 0x251   :  { %908 = vrot.lane.b32.xlu1 %v903_v8, %s1668_s7 }
 0x253   :  { %970 = vrot.lane.b32.xlu0 %v965_v9, %s1666_s29 }
 0x255   :  { %924 = vrot.lane.b32.xlu1 %v919_v11, %s1673_s12 }
 0x257   :  { %1000 = vrot.lane.b32.xlu0 %v995_v12, %s1669_s9 }
 0x259   :  { %955 = vrot.lane.b32.xlu1 %v950_v14, %s1661_s24 }
 0x25b   :  { %938 = vrot.lane.b32.xlu0 %v934_v17, %s1662_s25 }
 0x25d   :  { %985 = vrot.lane.b32.xlu1 %v980_v15, %s1665_s28 }
 0x25f   :  { %968 = vrot.lane.b32.xlu0 %v934_v17, %s1666_s29 }
 0x261   :  { %1030 = vrot.lane.b32.xlu1 %v1025_v42, %s1670_s10 }
 0x263   :  { %998 = vrot.lane.b32.xlu0 %v934_v17, %s1669_s9 }
 0x265   :  { %1046 = vrot.lane.b32.xlu1 %v1041_v43, %s1671_s11 }
 0x267   :  { %1028 = vrot.lane.b32.xlu0 %v934_v17, %s1670_s10 }
 0x269   :  { %953 = vrot.lane.b32.xlu1 %v934_v17, %s1661_s24 }
 0x26b   :  { %1044 = vrot.lane.b32.xlu0 %v934_v17, %s1671_s11 }
 0x26d   :  { %983 = vrot.lane.b32.xlu1 %v934_v17, %s1665_s28 }
 0x26f   :  { %1060 = vrot.lane.b32.xlu0 %v934_v17, %s1674_s13 }
 0x271   :  { %1013 = vrot.lane.b32.xlu1 %v934_v17, %s1656_s8 }
 0x273   :  { %1103 = vperm.xlu0 %1544, %v1100_v45  }
 0x275   :  { %1015 = vrot.lane.b32.xlu1 %v1010_v46, %s1656_s8 }
 0x279   :  { %1062 = vrot.lane.b32.xlu1 %v1057_v18, %s1674_s13 }
 0x2a1   :  { %v811_v19 = vpop.permute.xlu0 %810 }
 0x2a2   :  { %v814_v21 = vrot.slane %v811_v19, 4 }
 0x2a5   :  { %v827_v20 = vpop.permute.xlu0 %826 }
 0x2a6   :  { %v830_v25 = vrot.slane %v827_v20, 4 }
 0x2a9   :  { %v843_v0 = vpop.permute.xlu0 %842 }
 0x2aa   :  { %v846_v33 = vrot.slane %v843_v0, 4 }
 0x2ab   :  { %v813_v3 = vpop.permute.xlu1 %812 }
 0x2ac   :  { %v815_v1 = vrot.slane %v813_v3, 4  ;;  %821 = vst.msk [vmem:[#allocation2 + $0x1c] sm:$0xf] %vm155_vm0, %v813_v3 }
 0x2ad   :  { %v859_v4 = vpop.permute.xlu0 %858 }
 0x2ae   :  { %v816_v22 = vsel %vm167_vm1, %v814_v21, %v815_v1  ;;  %v862_v39 = vrot.slane %v859_v4, 4  ;;  %v2057_v21 = vld [vmem:[%s2136_s4] sm:$0xf]  ;;  %s1679_s4 = smov [#allocation9]  }
 0x2af   :  { %v817_v23 = vsel %vm169_vm2, %v811_v19, %v816_v22  ;;  %v829_v24 = vpop.permute.xlu1 %828  ;;  %vm2159_vm2 = vcmask 900096   ;;  %s1385_s20 = sshll.u32 %s1679_s4, 4  ;;  %s1386_s20 = int_to_ptr.vmem [resolvable:$true] %s1385_s20 }
 0x2b0   :  { %v831_v26 = vrot.slane %v829_v24, 4  ;;  %837 = vst.msk [vmem:[#allocation2 + $0x30] sm:$0xf] %vm155_vm0, %v829_v24  ;;  %v1434_v27 = vcombine.low %v1969_v53, %v817_v23  ;;  %v1435_v28 = vcombine.high %v1969_v53, %v817_v23  ;;  %s1626_s0 = scalar_lea.vmem %s1386_s20, 640  ;;  %p1631_p3 = scmp.lt.s32.totalorder %s1386_s20, %s1386_s20 }
 0x2b1   :  { %v875_v29 = vpop.permute.xlu0 %874  ;;  %p1627_p2 = scmp.ne.s32.totalorder %s1386_s20, %s1626_s0  ;;  %p1632_p4 = scmp.lt.s32.totalorder %s1626_s0, %s1626_s0 }
 0x2b2   :  { %v832_v30 = vsel %vm167_vm1, %v830_v25, %v831_v26  ;;  %1241 = vmatprep.subr.bf16.mxu1 %v1435_v28  ;;  %v878_v52 = vrot.slane %v875_v29, 4 }
 0x2b3   :  { %v833_v31 = vsel %vm186_vm3, %v827_v20, %v832_v30  ;;  %v845_v32 = vpop.permute.xlu1 %844  ;;  %1242 = vmatpush1.bf16.msra.mxu1 %v1434_v27  ;;  %vm2160_vm3 = vcmask 891904   ;;  %p1633_p5 = por %p1632_p4, %p1631_p3 }
 0x2b4   :  { %v847_v34 = vrot.slane %v845_v32, 4  ;;  %853 = vst.msk [vmem:[#allocation2 + $0x44] sm:$0xf] %vm155_vm0, %v845_v32 }
 0x2b5   :  { %v891_v35 = vpop.permute.xlu0 %890  ;;  %p1634_p6 = pnand %p1633_p5, %p1627_p2 }
 0x2b6   :  { %v848_v36 = vsel %vm167_vm1, %v846_v33, %v847_v34  ;;  %v894_v58 = vrot.slane %v891_v35, 4 }
 0x2b7   :  { %v849_v37 = vsel %vm2159_vm2, %v843_v0, %v848_v36  ;;  %v861_v38 = vpop.permute.xlu1 %860  ;;  %vm2173_vm2 = vmmov %vm2172_vm6 }
 0x2b8   :  { %v863_v40 = vrot.slane %v861_v38, 4  ;;  %869 = vst.msk [vmem:[#allocation2 + $0x58] sm:$0xf] %vm155_vm0, %v861_v38  ;;  %v1439_v41 = vcombine.low %v833_v31, %v849_v37  ;;  %v1440_v47 = vcombine.high %v833_v31, %v849_v37 }
 0x2b9   :  { %v907_v48 = vpop.permute.xlu0 %906 }
 0x2ba   :  { %v864_v49 = vsel %vm167_vm1, %v862_v39, %v863_v40  ;;  %1243 = vmatprep.subr.bf16.mxu1 %v1440_v47  ;;  %v910_v6 = vrot.slane %v907_v48, 4 }
 0x2bb   :  { %v865_v50 = vsel %vm2160_vm3, %v859_v4, %v864_v49  ;;  %v877_v51 = vpop.permute.xlu1 %876  ;;  %1244 = vmatpush1.bf16.msra.mxu1 %v1439_v41 }
 0x2bc   :  { %v879_v53 = vrot.slane %v877_v51, 4  ;;  %885 = vst.msk [vmem:[#allocation2 + $0x6c] sm:$0xf] %vm155_vm0, %v877_v51 }
 0x2bd   :  { %v923_v54 = vpop.permute.xlu0 %922 }
 0x2be   :  { %v880_v55 = vsel %vm167_vm1, %v878_v52, %v879_v53  ;;  %v926_v11 = vrot.slane %v923_v54, 4 }
 0x2bf   :  { %v881_v56 = vsel %vm2161_vm11, %v875_v29, %v880_v55  ;;  %v893_v57 = vpop.permute.xlu1 %892  ;;  %vm2175_vm11 = vcmask 1014784  }
 0x2c0   :  { %v895_v59 = vrot.slane %v893_v57, 4  ;;  %901 = vst.msk [vmem:[#allocation2 + $0x80] sm:$0xf] %vm155_vm0, %v893_v57  ;;  %v1444_v60 = vcombine.low %v865_v50, %v881_v56  ;;  %v1445_v61 = vcombine.high %v865_v50, %v881_v56 }
 0x2c1   :  { %v941_v62 = vpop.permute.xlu0 %940 }
 0x2c2   :  { %v896_v63 = vsel %vm167_vm1, %v894_v58, %v895_v59  ;;  %1245 = vmatprep.subr.bf16.mxu1 %v1445_v61 }
 0x2c3   :  { %v897_v2 = vsel %vm2162_vm4, %v891_v35, %v896_v63  ;;  %v909_v5 = vpop.permute.xlu1 %908  ;;  %1246 = vmatpush1.bf16.msra.mxu1 %v1444_v60  ;;  %vm2176_vm4 = vcmask 252928  }
 0x2c4   :  { %v911_v13 = vrot.slane %v909_v5, 4  ;;  %917 = vst.msk [vmem:[#allocation2 + $0x94] sm:$0xf] %vm155_vm0, %v909_v5 }
 0x2c5   :  { %v971_v7 = vpop.permute.xlu0 %970 }
 0x2c6   :  { %v912_v8 = vsel %vm167_vm1, %v910_v6, %v911_v13 }
 0x2c7   :  { %v913_v9 = vsel %vm2163_vm12, %v907_v48, %v912_v8  ;;  %v925_v10 = vpop.permute.xlu1 %924  ;;  %vm2177_vm12 = vmmov %vm2176_vm4 }
 0x2c8   :  { %v927_v12 = vrot.slane %v925_v10, 4  ;;  %933 = vst.msk [vmem:[#allocation2 + $0xa8] sm:$0xf] %vm155_vm0, %v925_v10  ;;  %v1449_v14 = vcombine.low %v897_v2, %v913_v9  ;;  %v1450_v15 = vcombine.high %v897_v2, %v913_v9  ;;  %vm2164_vm0 = vcmask 519168  }
 0x2c9   :  { %v1001_v17 = vpop.permute.xlu0 %1000  ;;  %vm2167_vm5 = vmmov %vm2164_vm0 }
 0x2ca   :  { %v928_v42 = vsel %vm167_vm1, %v926_v11, %v927_v12  ;;  %1247 = vmatprep.subr.bf16.mxu1 %v1450_v15  ;;  %vm2170_vm10 = vmmov %vm2164_vm0 }
 0x2cb   :  { %v929_v43 = vsel %vm288_vm15, %v923_v54, %v928_v42  ;;  %v956_v45 = vpop.permute.xlu1 %955  ;;  %1248 = vmatpush1.bf16.msra.mxu1 %v1449_v14  ;;  %vm2165_vm15 = vcmask 588800   ;;  %vm2171_vm7 = vmmov %vm2164_vm0 }
 0x2cc   :  { %v1455_v46 = vcombine.high %v929_v43, %v929_v43  ;;  %v1454_v18 = vcombine.low %v929_v43, %v929_v43  ;;  %vm2174_vm3 = vmmov %vm2164_vm0 }
 0x2cd   :  { %v939_v19 = vpop.permute.xlu0 %938 }
 0x2ce   :  { %v942_v20 = vrot.slane %v939_v19, 4  ;;  %1459 = vmatprep.subr.msk.bf16.mxu1 %vm167_vm1, %v1455_v46  ;;  %v1227_v0 = vsel %vm167_vm1, %v1454_v18, 0 }
 0x2cf   :  { %v986_v3 = vpop.permute.xlu1 %985  ;;  %1250 = vmatpush1.bf16.msra.mxu1 %v1227_v0 }
 0x2d0   :  { %v943_v1 = vsel %vm304_vm8, %v942_v20, %v939_v19  ;;  %v944_v4 = vsel %vm304_vm8, %v942_v20, %v941_v62  ;;  %1494 = vmatprep.subr.bf16.mxu1 %v1675_v16  ;;  %vm2169_vm8 = vmmov %vm2168_vm14 }
 0x2d1   :  { %947 = vst.msk [vmem:[#allocation2 + $0x8] sm:$0xff] %vm1807_vm9, %v943_v1  ;;  %v969_v22 = vpop.permute.xlu0 %968 }
 0x2d2   :  { %948 = vst.msk [vmem:[#allocation2 + $0x10] sm:$0xf] %vm2164_vm0, %v944_v4  ;;  %v972_v23 = vrot.slane %v969_v22, 4  ;;  %1460 = vmatmul.mubr.msk.bf16.vlgmr.msra.gmra.mrb[4].mxu1 %vm2165_vm15, %v2057_v21  ;;  %vm2178_vm15 = vcmask 1006592   ;;  %v1364_v4 = vld [vmem:[#allocation7 + $0x8] sm:$0xff] }
 0x2d3   :  { %v1031_v24 = vpop.permute.xlu1 %1030  ;;  %1504 = vmatprep.mubr.msk.bf16.mxu1 %vm2166_vm13, %v1675_v16  ;;  %vm2179_vm13 = vcmask 113664  }
 0x2d4   :  { %1039 = vst.msk [vmem:[#allocation2 + $0x88] sm:$0xf] %vm2167_vm5, %v1031_v24  ;;  %v973_v25 = vsel %vm2168_vm14, %v972_v23, %v969_v22  ;;  %v974_v26 = vsel %vm2169_vm8, %v972_v23, %v971_v7  ;;  %v1033_v33 = vrot.slane %v1031_v24, 4  ;;  %vm2180_vm5 = vmmov %vm2179_vm13  ;;  %vm2182_vm8 = vcmask 97280  }
 0x2d5   :  { %977 = vst.msk [vmem:[#allocation2 + $0x30] sm:$0xff] %vm1807_vm9, %v973_v25  ;;  %v999_v27 = vpop.permute.xlu0 %998  ;;  %vm2181_vm14 = vmmov %vm2164_vm0 }
 0x2d6   :  { %978 = vst.msk [vmem:[#allocation2 + $0x38] sm:$0xf] %vm2170_vm10, %v974_v26  ;;  %v1002_v28 = vrot.slane %v999_v27, 4  ;;  %vm2183_vm10 = vmmov %vm2182_vm8 }
 0x2d7   :  { %v1047_v29 = vpop.permute.xlu1 %1046 }
 0x2d8   :  { %1055 = vst.msk [vmem:[#allocation2 + $0x9c] sm:$0xf] %vm2171_vm7, %v1047_v29  ;;  %v1003_v30 = vsel %vm2172_vm6, %v1002_v28, %v999_v27  ;;  %v1004_v31 = vsel %vm2173_vm2, %v1002_v28, %v1001_v17  ;;  %v1049_v40 = vrot.slane %v1047_v29, 4  ;;  %vm2184_vm7 = vmmov %vm2164_vm0  ;;  %vm2186_vm2 = vcmask 998400   ;;  %v1367_v28 = vld [vmem:[#allocation7 + $0x20] sm:$0xff] }
 0x2d9   :  { %1007 = vst.msk [vmem:[#allocation2 + $0x58] sm:$0xff] %vm1807_vm9, %v1003_v30  ;;  %v1029_v32 = vpop.permute.xlu0 %1028  ;;  %vm2185_vm6 = vmmov %vm2164_vm0  ;;  %v1365_v30 = vld [vmem:[#allocation7 + $0x10] sm:$0xff] }
 0x2da   :  { %1008 = vst.msk [vmem:[#allocation2 + $0x60] sm:$0xf] %vm2174_vm3, %v1004_v31  ;;  %v1032_v34 = vrot.slane %v1029_v32, 4 }
 0x2db   :  { %v954_v35 = vpop.permute.xlu1 %953 }
 0x2dc   :  { %v957_v36 = vrot.slane %v954_v35, 4  ;;  %v1034_v37 = vsel %vm167_vm1, %v1032_v34, %v1033_v33  ;;  %v1366_v34 = vld [vmem:[#allocation7 + $0x18] sm:$0xff] }
 0x2dd   :  { %v1035_v38 = vsel %vm2175_vm11, %v1029_v32, %v1034_v37  ;;  %v1045_v39 = vpop.permute.xlu0 %1044 }
 0x2de   :  { %v958_v41 = vsel %vm2176_vm4, %v957_v36, %v954_v35  ;;  %v959_v47 = vsel %vm2177_vm12, %v957_v36, %v956_v45  ;;  %1038 = vst.msk [vmem:[#allocation2 + $0x80] sm:$0xff] %vm1807_vm9, %v1035_v38  ;;  %v1048_v48 = vrot.slane %v1045_v39, 4 }
 0x2df   :  { %962 = vst.msk [vmem:[#allocation2 + $0x1c] sm:$0xff] %vm1807_vm9, %v958_v41  ;;  %v984_v49 = vpop.permute.xlu1 %983  ;;  %v1578_v42 = vld [vmem:[#allocation2 + $0x88] ss:$20 sps:$4 sm:$0xff]  }
 0x2e0   :  { %963 = vst.msk [vmem:[#allocation2 + $0x24] sm:$0xf] %vm2164_vm0, %v959_v47  ;;  %v987_v50 = vrot.slane %v984_v49, 4  ;;  %v1050_v51 = vsel %vm167_vm1, %v1048_v48, %v1049_v40 }
 0x2e1   :  { %v1051_v52 = vsel %vm2178_vm15, %v1045_v39, %v1050_v51  ;;  %v1061_v63 = vpop.permute.xlu0 %1060 }
 0x2e2   :  { %v988_v53 = vsel %vm2179_vm13, %v987_v50, %v984_v49  ;;  %v989_v54 = vsel %vm2180_vm5, %v987_v50, %v986_v3  ;;  %1054 = vst.msk [vmem:[#allocation2 + $0x94] sm:$0xff] %vm1807_vm9, %v1051_v52  ;;  %v1064_v7 = vrot.slane %v1061_v63, 4  ;;  %v1363_v3 = vld [vmem:[#allocation7] sm:$0xff] }
 0x2e3   :  { %992 = vst.msk [vmem:[#allocation2 + $0x44] sm:$0xff] %vm1807_vm9, %v988_v53  ;;  %v1014_v55 = vpop.permute.xlu1 %1013 }
 0x2e4   :  { %993 = vst.msk [vmem:[#allocation2 + $0x4c] sm:$0xf] %vm2181_vm14, %v989_v54  ;;  %v1017_v56 = vrot.slane %v1014_v55, 4 }
 0x2e6   :  { %v1018_v57 = vsel %vm2182_vm8, %v1017_v56, %v1014_v55  ;;  %v1563_v58 = vld [vmem:[#allocation2 + $0x8] ss:$20 sps:$4 sm:$0xff]   ;;  %v1565_v59 = vld [vmem:[#allocation2 + $0xc] ss:$20 sps:$4 sm:$0xff]  }
 0x2e7   :  { %1022 = vst.msk [vmem:[#allocation2 + $0x6c] sm:$0xff] %vm1807_vm9, %v1018_v57  ;;  %v1016_v60 = vpop.permute.xlu1 %1015  ;;  %v1566_v61 = vld [vmem:[#allocation2 + $0x10] ss:$20 sps:$4 sm:$0xff]   ;;  %1282 = vmatprep.subr.bf16.mxu0 %v1565_v59 }
 0x2e8   :  { %v1019_v62 = vsel %vm2183_vm10, %v1017_v56, %v1016_v60  ;;  %1495 = vmatpush3.bf16.msra.mxu1 %v1566_v61  ;;  %1283 = vmatpush1.bf16.msra.mxu0 %v1563_v58 }
 0x2e9   :  { %1023 = vst.msk [vmem:[#allocation2 + $0x74] sm:$0xf] %vm2184_vm7, %v1019_v62  ;;  %1496 = vmatprep.subr.bf16.mxu1 %v1675_v16  ;;  %v1576_v14 = vld [vmem:[#allocation2 + $0x84] ss:$20 sps:$4 sm:$0xff]   ;;  %v1574_v17 = vld [vmem:[#allocation2 + $0x80] ss:$20 sps:$4 sm:$0xff]  }
 0x2ea   :  { %v1567_v2 = vld [vmem:[#allocation2 + $0x30] ss:$20 sps:$4 sm:$0xff]   ;;  %v1569_v5 = vld [vmem:[#allocation2 + $0x34] ss:$20 sps:$4 sm:$0xff]  }
 0x2eb   :  { %v1063_v6 = vpop.permute.xlu1 %1062  ;;  %v1570_v13 = vld [vmem:[#allocation2 + $0x38] ss:$20 sps:$4 sm:$0xff]   ;;  %1284 = vmatprep.subr.bf16.mxu0 %v1569_v5 }
 0x2ec   :  { %v1065_v8 = vrot.slane %v1063_v6, 4  ;;  %1071 = vst.msk [vmem:[#allocation2 + $0xb0] sm:$0xf] %vm2185_vm6, %v1063_v6  ;;  %1497 = vmatpush3.bf16.msra.mxu1 %v1570_v13  ;;  %1285 = vmatpush1.bf16.msra.mxu0 %v1567_v2 }
 0x2ed   :  { %1498 = vmatprep.subr.bf16.mxu1 %v1675_v16 }
 0x2ee   :  { %v1066_v9 = vsel %vm167_vm1, %v1064_v7, %v1065_v8  ;;  %v1571_v10 = vld [vmem:[#allocation2 + $0x58] ss:$20 sps:$4 sm:$0xff]   ;;  %v1573_v11 = vld [vmem:[#allocation2 + $0x5c] ss:$20 sps:$4 sm:$0xff]  }
 0x2ef   :  { %v1067_v12 = vsel %vm2186_vm2, %v1061_v63, %v1066_v9  ;;  %1286 = vmatprep.subr.bf16.mxu0 %v1573_v11 }
 0x2f0   :  { %1070 = vst.msk [vmem:[#allocation2 + $0xa8] sm:$0xff] %vm1807_vm9, %v1067_v12  ;;  %v1577_v15 = vld [vmem:[#allocation2 + $0x60] ss:$20 sps:$4 sm:$0xff]   ;;  %1287 = vmatpush1.bf16.msra.mxu0 %v1571_v10  ;;  %vm2187_vm9 = vcmask 588800  }
 0x2f1   :  { %1288 = vmatprep.subr.bf16.mxu0 %v1576_v14  ;;  %1499 = vmatpush3.bf16.msra.mxu1 %v1577_v15  ;;  %vm2188_vm3 = vmmov %vm2187_vm9 }
 0x2f2   :  { %1500 = vmatprep.subr.bf16.mxu1 %v1675_v16  ;;  %v1104_v20 = vpop.permute.xlu0 %1103 }
 0x2f3   :  { %v1581_v43 = vld [vmem:[#allocation2 + $0xb0] ss:$0 sps:$4 sm:$0xff]  }
 0x2f4   :  { %1289 = vmatpush1.bf16.msra.mxu0 %v1574_v17  ;;  %v1239_v44 = vsel %vm167_vm1, %v1581_v43, 0 }
 0x2f5   :  { %1501 = vmatpush3.bf16.msra.mxu1 %v1578_v42 }
 0x2f6   :  { %1502 = vmatprep.subr.bf16.mxu1 %v1675_v16 }
 0x2f7   :  { %v1098_v45 = vld [vmem:[#allocation2 + $0xa8] sm:$0xff] }
 0x2f8   :  { %v1457_v46 = vcombine.high %v1098_v45, %v1098_v45  ;;  %v1456_v18 = vcombine.low %v1098_v45, %v1098_v45 }
 0x2f9   :  { %1503 = vmatpush3.bf16.msra.mxu1 %v1239_v44 }
 0x2fa   :  { %1461 = vmatprep.subr.msk.bf16.mxu0 %vm167_vm1, %v1457_v46  ;;  %v1233_v19 = vsel %vm167_vm1, %v1456_v18, 0  ;;  %vm1377_vm1 = vcmask 523264  }
 0x2fb   :  { %1291 = vmatpush1.bf16.msra.mxu0 %v1233_v19 }
 0x2fc   :  { %1505 = vmatmul.mubr.msk.bf16.vlgmr.msra.gmra.mrb[8].mxu1 %vm2187_vm9, %v2057_v21 }
 0x2fe   :  { %1462 = vmatmul.mubr.msk.bf16.vlgmr.msra.gmra.mrb[8].mxu0 %vm2188_vm3, %v2057_v21 }
 0x3a5   :  { %v1275_v0 = vpop.f32.mrb[4].mxu1 }
 0x3a6   :  { %v1276_v16 = vadd.f32 %v1275_v0, %v1104_v20  ;;  %v1277_v1 = vpop.f32.mrb[5].mxu1 }
 0x3a7   :  { %v1278_v22 = vadd.f32 %v1277_v1, %v1104_v20  ;;  %v1279_v23 = vpop.f32.mrb[6].mxu1 }
 0x3a8   :  { %v1368_v24 = vadd.f32 %v1363_v3, %v1276_v16  ;;  %v1280_v25 = vpop.f32.mrb[7].mxu1 }
 0x3a9   :  { %v1369_v26 = vadd.f32 %v1364_v4, %v1278_v22 }
 0x3aa   :  { %1373 = vst [vmem:[#allocation9] sm:$0xff] %v1368_v24 }
 0x3ab   :  { %1374 = vst [vmem:[#allocation9 + $0x8] sm:$0xff] %v1369_v26 }
 0x3cf   :  { %v1357_v27 = vpop.f32.mrb[8].mxu1 }
 0x3d0   :  { %v1358_v31 = vadd.f32 %v1357_v27, %v1104_v20  ;;  %v1506_v32 = vpop.f32.mrb[9].mxu1 }
 0x3d1   :  { %v1316_v29 = vpop.f32.mrb[8].mxu0  ;;  %v1360_v35 = vpop.f32.mrb[10].mxu1 }
 0x3d2   :  { %v1317_v21 = vadd.f32 %v1316_v29, %v1104_v20  ;;  %v1318_v33 = vpop.f32.mrb[9].mxu0  ;;  %v1372_v36 = vadd.f32 %v1367_v28, %v1358_v31  ;;  %v1507_v39 = vpop.f32.mrb[11].mxu1 }
 0x3d3   :  { %v1319_v37 = vadd.f32 %v1318_v33, %v1104_v20  ;;  %v1320_v38 = vpop.f32.mrb[10].mxu0 }
 0x3d4   :  { %v1370_v40 = vadd.f32 %v1365_v30, %v1317_v21  ;;  %v1321_v41 = vpop.f32.mrb[11].mxu0  ;;  %1378 = vst.msk [vmem:[#allocation9 + $0x20] sm:$0xff] %vm1377_vm1, %v1372_v36 }
 0x3d5   :  { %v1371_v47 = vadd.f32 %v1366_v34, %v1319_v37 }
 0x3d6   :  { %1375 = vst [vmem:[#allocation9 + $0x10] sm:$0xff] %v1370_v40 }
 0x3d7   :  { %1376 = vst [vmem:[#allocation9 + $0x18] sm:$0xff] %v1371_v47 }
 0x3d8   :  { %1637 = shalt.err (!%p1634_p6)
}
 0x3d9   :  { %s1638_s23 = scalar_lea.hbm %s2138_s6, 640 }
 0x3da   :  { %p1639_p7 = scmp.ne.s32.totalorder %s2138_s6, %s1638_s23  ;;  %p1642_p8 = scmp.lt.u32.totalorder %s1638_s23, %s2138_s6 }
 0x3dc   :  { %p1644_p9 = pnand %p1642_p8, %p1639_p7 }
 0x3de   :  { %1647 = shalt.err (!%p1644_p9)
}
 0x3df   :  { %1388 = dma.vmem_to_hbm [thread:$0]  %s1386_s20, 640, %s2138_s6, [#allocation6]  }
 0x3e0   :  { %1652 = dma.done.wait [#allocation6], 640  }
 0x3e1   :  { %1653 = vsyncadd [#allocation6], 4294966656 }
 0x3e2   :  { %1392 = vsyncpa [#allocation5], 1 }
 0x3e3   :  { %1393 = vsyncpa [#allocation8], 1 }
 0x3e4   :  { %1394 = vsyncpa [#allocation6], 1 }

</bundles_post_ra>
